<compile_context>
chip_gen: v6e
topology: v6e:2x2x1
jax: 0.10.0
libtpu: 0.0.40
codegen_flags: <defaults>
</compile_context>

<pallas_src>
import jax
import jax.numpy as jnp
from jax.experimental import pallas as pl
from jax.experimental.pallas import tpu as pltpu


def _roundup(v, m):
    return ((v + m - 1) // m) * m


def _pad_to(a, shape):
    return jnp.pad(a, [(0, s - d) for d, s in zip(a.shape, shape)])


# ----------------------------- Pallas kernel --------------------------------
def rnn_kernel(x_ref, h0_ref, wih0_ref, wih_ref, whh_ref, b_ref,
               wfc_ref, bfc_ref, out_ref, hn_ref, seq_ref):
    """Full stacked-RNN forward pass for one batch block.

    x_ref    : (T, TB, Dp)            bf16  time-major input block
    h0_ref   : (L, TB, Hp)            f32   initial hidden states
    wih0_ref : (Dp, Hp)               bf16  W_ih layer 0 (transposed)
    wih_ref  : (max(L-1,1), Hp, Hp)   bf16  W_ih layers 1..L-1 (transposed)
    whh_ref  : (L, Hp, Hp)            bf16  W_hh (transposed)
    b_ref    : (L, 1, Hp)             f32   b_ih + b_hh
    wfc_ref  : (Hp, Op)               bf16  fc weight (transposed)
    bfc_ref  : (1, Op)                f32   fc bias
    out_ref  : (TB, Op)               f32   sigmoid(fc(h_last))
    hn_ref   : (L, TB, Hp)            f32   final hidden state per layer
    seq_ref  : (T, TB, Hp)            bf16  VMEM scratch: one layer's sequence
    """
    T, TB, _ = x_ref.shape
    L = h0_ref.shape[0]
    last = L - 1
    TC = T if T <= 8 else 8                       # projection chunk length
    chunks = [(s, min(TC, T - s)) for s in range(0, T, TC)]
    # TODO(synk): for long T convert the chunk loop to lax.fori_loop (unroll=4..8)
    #             with chunk projections staged in a scratch ref, and stream x /
    #             seq in T-chunks (BlockSpec or manual double-buffered DMA) instead
    #             of full VMEM residency -- required to scale on v7x's 64 MiB VMEM.

    def proj_chunk(inp, w, bias):
        # inp: (tc, TB, K) bf16 value.  TB % 16 == 0 and K % 128 == 0, so merging
        # the two leading dims is tile-aligned (no VMEM relayout / copy).
        tc, tb, k = inp.shape
        p = jnp.dot(inp.reshape(tc * tb, k), w,
                    preferred_element_type=jnp.float32)
        return p.reshape(tc, tb, -1) + bias        # (tc, TB, Hp) f32

    def run_layer(l, load_chunk, w_in, h):
        # Hoist per-layer constants out of the time loop (no per-iteration
        # re-reads / re-broadcasts).
        whh_l = whh_ref[l]                         # (Hp, Hp) bf16
        bias = b_ref[l]                            # (1, Hp)  f32
        for (s, tc) in chunks:
            # Whole-chunk input projection in one MXU call, fully materialized
            # BEFORE any of its seq_ref slots are overwritten below.
            projc = proj_chunk(load_chunk(s, tc), w_in, bias)
            for i in range(tc):
                h = jnp.tanh(projc[i] +
                             jnp.dot(h.astype(jnp.bfloat16), whh_l,
                                     preferred_element_type=jnp.float32))
                if l != last:                      # last layer: only h is needed
                    seq_ref[s + i] = h.astype(jnp.bfloat16)
        hn_ref[l] = h
        return h

    # layer 0: projection straight from the input x.
    h = run_layer(0, lambda s, tc: x_ref[pl.ds(s, tc)], wih0_ref[...], h0_ref[0])

    # layers 1..L-1: projection from the previous layer's sequence (scratch).
    for l in range(1, L):
        h = run_layer(l, lambda s, tc: seq_ref[pl.ds(s, tc)],
                      wih_ref[l - 1], h0_ref[l])

    # fc on the last timestep of the last layer (== h) + sigmoid.
    logits = jnp.dot(h.astype(jnp.bfloat16), wfc_ref[...],
                     preferred_element_type=jnp.float32) + bfc_ref[...]
    out_ref[...] = 1.0 / (1.0 + jnp.exp(-logits))


# ------------------------------- wrapper -------------------------------------
@jax.jit
def rnn_forward(x, h0, w_ih0, w_ih_rest, w_hh, b_ih, b_hh, w_fc, b_fc):
    """x: (B, T, Din) f32 (PyTorch batch_first). Returns (out:(B,O), hn:(L,B,H))."""
    B, T, Din = x.shape
    L, _, H = h0.shape
    O = w_fc.shape[0]

    # Lane/sublane-dense padded sizes (biggest single measured lever: unmasked vst
    # + full MXU columns).  H/Din/O -> 128 lanes, B -> 16 sublanes (bf16 pack).
    Bp = _roundup(B, 16)
    Hp = _roundup(H, 128)
    Dp = _roundup(Din, 128)
    Op = _roundup(O, 128)

    # Glue: transpose-to-time-major + pad + bf16 cast of x fuses into one copy.
    # TODO(synk): when streaming x in T-chunks for long T, fold the (B,T,D)->(T,B,D)
    #             permutation into the BlockSpec index_map instead of a wrapper copy.
    x_p = _pad_to(jnp.transpose(x, (1, 0, 2)), (T, Bp, Dp)).astype(jnp.bfloat16)
    h0_p = _pad_to(h0, (L, Bp, Hp)).astype(jnp.float32)
    wih0_p = _pad_to(w_ih0.T, (Dp, Hp)).astype(jnp.bfloat16)
    if w_ih_rest.shape[0] == 0:        # L == 1: tiny never-read placeholder
        wih_p = jnp.zeros((1, Hp, Hp), jnp.bfloat16)
    else:
        wih_p = _pad_to(jnp.transpose(w_ih_rest, (0, 2, 1)),
                        (L - 1, Hp, Hp)).astype(jnp.bfloat16)
    whh_p = _pad_to(jnp.transpose(w_hh, (0, 2, 1)), (L, Hp, Hp)).astype(jnp.bfloat16)
    b_p = _pad_to((b_ih + b_hh)[:, None, :], (L, 1, Hp)).astype(jnp.float32)
    wfc_p = _pad_to(w_fc.T, (Hp, Op)).astype(jnp.bfloat16)
    bfc_p = _pad_to(b_fc[None, :], (1, Op)).astype(jnp.float32)

    # Batch grid axis: the recurrence is sequential in T but independent in B.
    # TODO(synk): at realistic B set TB = Bp // 2 so the "parallel" axis shards
    #             across v7x's two TensorCores.
    TB = Bp
    grid = (Bp // TB,)

    # Scoped-VMEM budget sized to the actual resident buffers (+ headroom),
    # capped below v7x's 64 MiB physical VMEM.
    resident = (x_p.size * 2 + h0_p.size * 4 + wih0_p.size * 2 + wih_p.size * 2
                + whh_p.size * 2 + b_p.size * 4 + wfc_p.size * 2 + bfc_p.size * 4
                + Bp * Op * 4 + L * Bp * Hp * 4)
    scratch_bytes = T * TB * Hp * 2
    vmem_limit = int(min(max(2 * resident + scratch_bytes + (4 << 20), 16 << 20),
                         60 << 20))

    vmem = pltpu.MemorySpace.VMEM
    out, hn = pl.pallas_call(
        rnn_kernel,
        out_shape=(jax.ShapeDtypeStruct((Bp, Op), jnp.float32),
                   jax.ShapeDtypeStruct((L, Bp, Hp), jnp.float32)),
        grid=grid,
        in_specs=[
            pl.BlockSpec((T, TB, Dp), lambda b: (0, b, 0)),   # x  (batch-blocked)
            pl.BlockSpec((L, TB, Hp), lambda b: (0, b, 0)),   # h0 (batch-blocked)
            pl.BlockSpec(memory_space=vmem),                  # wih0
            pl.BlockSpec(memory_space=vmem),                  # wih layers 1..L-1
            pl.BlockSpec(memory_space=vmem),                  # whh
            pl.BlockSpec(memory_space=vmem),                  # bias
            pl.BlockSpec(memory_space=vmem),                  # wfc
            pl.BlockSpec(memory_space=vmem),                  # bfc
        ],
        out_specs=(
            pl.BlockSpec((TB, Op), lambda b: (b, 0)),         # out
            pl.BlockSpec((L, TB, Hp), lambda b: (0, b, 0)),   # hn
        ),
        scratch_shapes=[pltpu.VMEM((T, TB, Hp), jnp.bfloat16)],
        compiler_params=pltpu.CompilerParams(
            dimension_semantics=("parallel",),
            vmem_limit_bytes=vmem_limit),
    )(x_p, h0_p, wih0_p, wih_p, whh_p, b_p, wfc_p, bfc_p)

    return out[:B, :O], hn[:, :B, :H]


# --------------------------- pure-JAX reference -------------------------------
def rnn_reference(x, h0, w_ih0, w_ih_rest, w_hh, b_ih, b_hh, w_fc, b_fc):
    B, T, Din = x.shape
    L, _, H = h0.shape
    seq = x
    hn = []
    for l in range(L):
        w_ih = w_ih0 if l == 0 else w_ih_rest[l - 1]
        h = h0[l]
        outs = []
        for t in range(T):
            h = jnp.tanh(seq[:, t, :] @ w_ih.T + b_ih[l] + h @ w_hh[l].T + b_hh[l])
            outs.append(h)
        seq = jnp.stack(outs, axis=1)
        hn.append(h)
    hn = jnp.stack(hn, axis=0)
    out = jax.nn.sigmoid(seq[:, -1, :] @ w_fc.T + b_fc)
    return out, hn


# --------------------------------- main ---------------------------------------
if __name__ == "__main__":
    B, T = 2, 8
    INPUT_SIZE = 16
    HIDDEN_SIZE = 32
    NUM_LAYERS = 3
    OUTPUT_SIZE = 4

    key = jax.random.PRNGKey(0)
    keys = jax.random.split(key, 10)
    k = 1.0 / jnp.sqrt(HIDDEN_SIZE)
    uni = lambda kk, shape: jax.random.uniform(kk, shape, jnp.float32, -k, k)

    # PyTorch nn.RNN parameter shapes (deterministic synthetic init)
    w_ih0 = uni(keys[0], (HIDDEN_SIZE, INPUT_SIZE))                       # layer 0 W_ih
    w_ih_rest = uni(keys[1], (NUM_LAYERS - 1, HIDDEN_SIZE, HIDDEN_SIZE))  # layers 1.. W_ih
    w_hh = uni(keys[2], (NUM_LAYERS, HIDDEN_SIZE, HIDDEN_SIZE))           # W_hh
    b_ih = uni(keys[3], (NUM_LAYERS, HIDDEN_SIZE))
    b_hh = uni(keys[4], (NUM_LAYERS, HIDDEN_SIZE))
    w_fc = uni(keys[5], (OUTPUT_SIZE, HIDDEN_SIZE))                       # nn.Linear weight
    b_fc = uni(keys[6], (OUTPUT_SIZE,))

    x = jax.random.normal(keys[7], (B, T, INPUT_SIZE), jnp.float32)
    h0 = 0.5 * jax.random.normal(keys[8], (NUM_LAYERS, B, HIDDEN_SIZE), jnp.float32)

    out, hn = rnn_forward(x, h0, w_ih0, w_ih_rest, w_hh, b_ih, b_hh, w_fc, b_fc)
    jax.block_until_ready((out, hn))

    out_ref, hn_ref = rnn_reference(x, h0, w_ih0, w_ih_rest, w_hh, b_ih, b_hh, w_fc, b_fc)
    assert out.shape == (B, OUTPUT_SIZE) and hn.shape == (NUM_LAYERS, B, HIDDEN_SIZE)
    # bf16 MXU operands (f32 accumulation) => looser tolerance than an all-f32 run.
    assert jnp.allclose(out, out_ref, atol=5e-2, rtol=5e-2)
    assert jnp.allclose(hn, hn_ref, atol=5e-2, rtol=5e-2)

    print("KERNEL_OK")
</pallas_src>

<mosaic_0001>
module attributes {stable_mosaic.version = 11 : i64} {
  func.func @rnn_kernel(%arg0: i32, %arg1: memref<8x16x128xbf16, #tpu.memory_space<vmem>>, %arg2: memref<3x16x128xf32, #tpu.memory_space<vmem>>, %arg3: memref<128x128xbf16, #tpu.memory_space<vmem>>, %arg4: memref<2x128x128xbf16, #tpu.memory_space<vmem>>, %arg5: memref<3x128x128xbf16, #tpu.memory_space<vmem>>, %arg6: memref<3x1x128xf32, #tpu.memory_space<vmem>>, %arg7: memref<128x128xbf16, #tpu.memory_space<vmem>>, %arg8: memref<1x128xf32, #tpu.memory_space<vmem>>, %arg9: memref<16x128xf32, #tpu.memory_space<vmem>>, %arg10: memref<3x16x128xf32, #tpu.memory_space<vmem>>, %arg11: memref<8x16x128xbf16, #tpu.memory_space<vmem>>) attributes {dimension_semantics = [#tpu.dimension_semantics<parallel>], iteration_bounds = array<i64: 1>, scalar_prefetch = 0 : i64, scratch_operands = 1 : i64, tpu.core_type = #tpu.core_type<tc>, window_params = [{transform_indices = @transform_0, window_bounds = array<i64: 8, 16, 128>}, {transform_indices = @transform_1, window_bounds = array<i64: 3, 16, 128>}, {pipeline_mode = #tpu.pipeline_mode<synchronous>, transform_indices = @transform_2, window_bounds = array<i64: 128, 128>}, {pipeline_mode = #tpu.pipeline_mode<synchronous>, transform_indices = @transform_3, window_bounds = array<i64: 2, 128, 128>}, {pipeline_mode = #tpu.pipeline_mode<synchronous>, transform_indices = @transform_4, window_bounds = array<i64: 3, 128, 128>}, {pipeline_mode = #tpu.pipeline_mode<synchronous>, transform_indices = @transform_5, window_bounds = array<i64: 3, 1, 128>}, {pipeline_mode = #tpu.pipeline_mode<synchronous>, transform_indices = @transform_6, window_bounds = array<i64: 128, 128>}, {pipeline_mode = #tpu.pipeline_mode<synchronous>, transform_indices = @transform_7, window_bounds = array<i64: 1, 128>}, {transform_indices = @transform_8, window_bounds = array<i64: 16, 128>}, {transform_indices = @transform_9, window_bounds = array<i64: 3, 16, 128>}]} {
    %c0 = arith.constant 0 : index
    %c0_0 = arith.constant 0 : index
    %0 = vector.load %arg3[%c0, %c0_0] : memref<128x128xbf16, #tpu.memory_space<vmem>>, vector<128x128xbf16>
    %c0_1 = arith.constant 0 : index
    %c0_2 = arith.constant 0 : index
    %c0_3 = arith.constant 0 : index
    %1 = vector.load %arg2[%c0_1, %c0_2, %c0_3] : memref<3x16x128xf32, #tpu.memory_space<vmem>>, vector<1x16x128xf32>
    %2 = vector.shape_cast %1 : vector<1x16x128xf32> to vector<16x128xf32>
    %c0_4 = arith.constant 0 : index
    %c0_5 = arith.constant 0 : index
    %c0_6 = arith.constant 0 : index
    %3 = vector.load %arg5[%c0_4, %c0_5, %c0_6] : memref<3x128x128xbf16, #tpu.memory_space<vmem>>, vector<1x128x128xbf16>
    %4 = vector.shape_cast %3 : vector<1x128x128xbf16> to vector<128x128xbf16>
    %c0_7 = arith.constant 0 : index
    %c0_8 = arith.constant 0 : index
    %c0_9 = arith.constant 0 : index
    %5 = vector.load %arg6[%c0_7, %c0_8, %c0_9] : memref<3x1x128xf32, #tpu.memory_space<vmem>>, vector<1x1x128xf32>
    %6 = vector.shape_cast %5 : vector<1x1x128xf32> to vector<1x128xf32>
    %c0_10 = arith.constant 0 : index
    %c0_11 = arith.constant 0 : index
    %c0_12 = arith.constant 0 : index
    %7 = vector.load %arg1[%c0_10, %c0_11, %c0_12] : memref<8x16x128xbf16, #tpu.memory_space<vmem>>, vector<8x16x128xbf16>
    %8 = vector.shape_cast %7 : vector<8x16x128xbf16> to vector<128x128xbf16>
    %cst = arith.constant dense<0.000000e+00> : vector<128x128xf32>
    %9 = tpu.matmul %8, %0, %cst {dimension_numbers = #tpu.dot_dimension_numbers<[1], [0], [0], [1], [0, 0, 1, 1], [], []>} : vector<128x128xbf16>, vector<128x128xbf16>, vector<128x128xf32> -> vector<128x128xf32>
    %10 = vector.shape_cast %9 : vector<128x128xf32> to vector<8x16x128xf32>
    %11 = vector.shape_cast %6 : vector<1x128xf32> to vector<1x1x128xf32>
    %12 = vector.broadcast %11 : vector<1x1x128xf32> to vector<8x16x128xf32>
    %13 = arith.addf %10, %12 : vector<8x16x128xf32>
    %14 = vector.extract_strided_slice %13 {offsets = [0, 0, 0], sizes = [1, 16, 128], strides = [1, 1, 1]} : vector<8x16x128xf32> to vector<1x16x128xf32>
    %15 = vector.shape_cast %14 : vector<1x16x128xf32> to vector<16x128xf32>
    %16 = arith.truncf %2 : vector<16x128xf32> to vector<16x128xbf16>
    %cst_13 = arith.constant dense<0.000000e+00> : vector<16x128xf32>
    %17 = tpu.matmul %16, %4, %cst_13 {dimension_numbers = #tpu.dot_dimension_numbers<[1], [0], [0], [1], [0, 0, 1, 1], [], []>} : vector<16x128xbf16>, vector<128x128xbf16>, vector<16x128xf32> -> vector<16x128xf32>
    %18 = arith.addf %15, %17 : vector<16x128xf32>
    %19 = math.tanh %18 : vector<16x128xf32>
    %20 = arith.truncf %19 : vector<16x128xf32> to vector<16x128xbf16>
    %c0_14 = arith.constant 0 : index
    %c0_15 = arith.constant 0 : index
    %c0_16 = arith.constant 0 : index
    %21 = vector.load %arg11[%c0_14, %c0_15, %c0_16] : memref<8x16x128xbf16, #tpu.memory_space<vmem>>, vector<1x16x128xbf16>
    %22 = vector.shape_cast %21 : vector<1x16x128xbf16> to vector<16x128xbf16>
    %23 = vector.shape_cast %20 : vector<16x128xbf16> to vector<1x16x128xbf16>
    tpu.vector_store %arg11[%c0_14, %c0_15, %c0_16], %23 {strides = array<i32>} : memref<8x16x128xbf16, #tpu.memory_space<vmem>>, vector<1x16x128xbf16>,
    %24 = vector.extract_strided_slice %13 {offsets = [1, 0, 0], sizes = [1, 16, 128], strides = [1, 1, 1]} : vector<8x16x128xf32> to vector<1x16x128xf32>
    %25 = vector.shape_cast %24 : vector<1x16x128xf32> to vector<16x128xf32>
    %26 = arith.truncf %19 : vector<16x128xf32> to vector<16x128xbf16>
    %cst_17 = arith.constant dense<0.000000e+00> : vector<16x128xf32>
    %27 = tpu.matmul %26, %4, %cst_17 {dimension_numbers = #tpu.dot_dimension_numbers<[1], [0], [0], [1], [0, 0, 1, 1], [], []>} : vector<16x128xbf16>, vector<128x128xbf16>, vector<16x128xf32> -> vector<16x128xf32>
    %28 = arith.addf %25, %27 : vector<16x128xf32>
    %29 = math.tanh %28 : vector<16x128xf32>
    %30 = arith.truncf %29 : vector<16x128xf32> to vector<16x128xbf16>
    %c1 = arith.constant 1 : index
    %c0_18 = arith.constant 0 : index
    %c0_19 = arith.constant 0 : index
    %31 = vector.load %arg11[%c1, %c0_18, %c0_19] : memref<8x16x128xbf16, #tpu.memory_space<vmem>>, vector<1x16x128xbf16>
    %32 = vector.shape_cast %31 : vector<1x16x128xbf16> to vector<16x128xbf16>
    %33 = vector.shape_cast %30 : vector<16x128xbf16> to vector<1x16x128xbf16>
    tpu.vector_store %arg11[%c1, %c0_18, %c0_19], %33 {strides = array<i32>} : memref<8x16x128xbf16, #tpu.memory_space<vmem>>, vector<1x16x128xbf16>,
    %34 = vector.extract_strided_slice %13 {offsets = [2, 0, 0], sizes = [1, 16, 128], strides = [1, 1, 1]} : vector<8x16x128xf32> to vector<1x16x128xf32>
    %35 = vector.shape_cast %34 : vector<1x16x128xf32> to vector<16x128xf32>
    %36 = arith.truncf %29 : vector<16x128xf32> to vector<16x128xbf16>
    %cst_20 = arith.constant dense<0.000000e+00> : vector<16x128xf32>
    %37 = tpu.matmul %36, %4, %cst_20 {dimension_numbers = #tpu.dot_dimension_numbers<[1], [0], [0], [1], [0, 0, 1, 1], [], []>} : vector<16x128xbf16>, vector<128x128xbf16>, vector<16x128xf32> -> vector<16x128xf32>
    %38 = arith.addf %35, %37 : vector<16x128xf32>
    %39 = math.tanh %38 : vector<16x128xf32>
    %40 = arith.truncf %39 : vector<16x128xf32> to vector<16x128xbf16>
    %c2 = arith.constant 2 : index
    %c0_21 = arith.constant 0 : index
    %c0_22 = arith.constant 0 : index
    %41 = vector.load %arg11[%c2, %c0_21, %c0_22] : memref<8x16x128xbf16, #tpu.memory_space<vmem>>, vector<1x16x128xbf16>
    %42 = vector.shape_cast %41 : vector<1x16x128xbf16> to vector<16x128xbf16>
    %43 = vector.shape_cast %40 : vector<16x128xbf16> to vector<1x16x128xbf16>
    tpu.vector_store %arg11[%c2, %c0_21, %c0_22], %43 {strides = array<i32>} : memref<8x16x128xbf16, #tpu.memory_space<vmem>>, vector<1x16x128xbf16>,
    %44 = vector.extract_strided_slice %13 {offsets = [3, 0, 0], sizes = [1, 16, 128], strides = [1, 1, 1]} : vector<8x16x128xf32> to vector<1x16x128xf32>
    %45 = vector.shape_cast %44 : vector<1x16x128xf32> to vector<16x128xf32>
    %46 = arith.truncf %39 : vector<16x128xf32> to vector<16x128xbf16>
    %cst_23 = arith.constant dense<0.000000e+00> : vector<16x128xf32>
    %47 = tpu.matmul %46, %4, %cst_23 {dimension_numbers = #tpu.dot_dimension_numbers<[1], [0], [0], [1], [0, 0, 1, 1], [], []>} : vector<16x128xbf16>, vector<128x128xbf16>, vector<16x128xf32> -> vector<16x128xf32>
    %48 = arith.addf %45, %47 : vector<16x128xf32>
    %49 = math.tanh %48 : vector<16x128xf32>
    %50 = arith.truncf %49 : vector<16x128xf32> to vector<16x128xbf16>
    %c3 = arith.constant 3 : index
    %c0_24 = arith.constant 0 : index
    %c0_25 = arith.constant 0 : index
    %51 = vector.load %arg11[%c3, %c0_24, %c0_25] : memref<8x16x128xbf16, #tpu.memory_space<vmem>>, vector<1x16x128xbf16>
    %52 = vector.shape_cast %51 : vector<1x16x128xbf16> to vector<16x128xbf16>
    %53 = vector.shape_cast %50 : vector<16x128xbf16> to vector<1x16x128xbf16>
    tpu.vector_store %arg11[%c3, %c0_24, %c0_25], %53 {strides = array<i32>} : memref<8x16x128xbf16, #tpu.memory_space<vmem>>, vector<1x16x128xbf16>,
    %54 = vector.extract_strided_slice %13 {offsets = [4, 0, 0], sizes = [1, 16, 128], strides = [1, 1, 1]} : vector<8x16x128xf32> to vector<1x16x128xf32>
    %55 = vector.shape_cast %54 : vector<1x16x128xf32> to vector<16x128xf32>
    %56 = arith.truncf %49 : vector<16x128xf32> to vector<16x128xbf16>
    %cst_26 = arith.constant dense<0.000000e+00> : vector<16x128xf32>
    %57 = tpu.matmul %56, %4, %cst_26 {dimension_numbers = #tpu.dot_dimension_numbers<[1], [0], [0], [1], [0, 0, 1, 1], [], []>} : vector<16x128xbf16>, vector<128x128xbf16>, vector<16x128xf32> -> vector<16x128xf32>
    %58 = arith.addf %55, %57 : vector<16x128xf32>
    %59 = math.tanh %58 : vector<16x128xf32>
    %60 = arith.truncf %59 : vector<16x128xf32> to vector<16x128xbf16>
    %c4 = arith.constant 4 : index
    %c0_27 = arith.constant 0 : index
    %c0_28 = arith.constant 0 : index
    %61 = vector.load %arg11[%c4, %c0_27, %c0_28] : memref<8x16x128xbf16, #tpu.memory_space<vmem>>, vector<1x16x128xbf16>
    %62 = vector.shape_cast %61 : vector<1x16x128xbf16> to vector<16x128xbf16>
    %63 = vector.shape_cast %60 : vector<16x128xbf16> to vector<1x16x128xbf16>
    tpu.vector_store %arg11[%c4, %c0_27, %c0_28], %63 {strides = array<i32>} : memref<8x16x128xbf16, #tpu.memory_space<vmem>>, vector<1x16x128xbf16>,
    %64 = vector.extract_strided_slice %13 {offsets = [5, 0, 0], sizes = [1, 16, 128], strides = [1, 1, 1]} : vector<8x16x128xf32> to vector<1x16x128xf32>
    %65 = vector.shape_cast %64 : vector<1x16x128xf32> to vector<16x128xf32>
    %66 = arith.truncf %59 : vector<16x128xf32> to vector<16x128xbf16>
    %cst_29 = arith.constant dense<0.000000e+00> : vector<16x128xf32>
    %67 = tpu.matmul %66, %4, %cst_29 {dimension_numbers = #tpu.dot_dimension_numbers<[1], [0], [0], [1], [0, 0, 1, 1], [], []>} : vector<16x128xbf16>, vector<128x128xbf16>, vector<16x128xf32> -> vector<16x128xf32>
    %68 = arith.addf %65, %67 : vector<16x128xf32>
    %69 = math.tanh %68 : vector<16x128xf32>
    %70 = arith.truncf %69 : vector<16x128xf32> to vector<16x128xbf16>
    %c5 = arith.constant 5 : index
    %c0_30 = arith.constant 0 : index
    %c0_31 = arith.constant 0 : index
    %71 = vector.load %arg11[%c5, %c0_30, %c0_31] : memref<8x16x128xbf16, #tpu.memory_space<vmem>>, vector<1x16x128xbf16>
    %72 = vector.shape_cast %71 : vector<1x16x128xbf16> to vector<16x128xbf16>
    %73 = vector.shape_cast %70 : vector<16x128xbf16> to vector<1x16x128xbf16>
    tpu.vector_store %arg11[%c5, %c0_30, %c0_31], %73 {strides = array<i32>} : memref<8x16x128xbf16, #tpu.memory_space<vmem>>, vector<1x16x128xbf16>,
    %74 = vector.extract_strided_slice %13 {offsets = [6, 0, 0], sizes = [1, 16, 128], strides = [1, 1, 1]} : vector<8x16x128xf32> to vector<1x16x128xf32>
    %75 = vector.shape_cast %74 : vector<1x16x128xf32> to vector<16x128xf32>
    %76 = arith.truncf %69 : vector<16x128xf32> to vector<16x128xbf16>
    %cst_32 = arith.constant dense<0.000000e+00> : vector<16x128xf32>
    %77 = tpu.matmul %76, %4, %cst_32 {dimension_numbers = #tpu.dot_dimension_numbers<[1], [0], [0], [1], [0, 0, 1, 1], [], []>} : vector<16x128xbf16>, vector<128x128xbf16>, vector<16x128xf32> -> vector<16x128xf32>
    %78 = arith.addf %75, %77 : vector<16x128xf32>
    %79 = math.tanh %78 : vector<16x128xf32>
    %80 = arith.truncf %79 : vector<16x128xf32> to vector<16x128xbf16>
    %c6 = arith.constant 6 : index
    %c0_33 = arith.constant 0 : index
    %c0_34 = arith.constant 0 : index
    %81 = vector.load %arg11[%c6, %c0_33, %c0_34] : memref<8x16x128xbf16, #tpu.memory_space<vmem>>, vector<1x16x128xbf16>
    %82 = vector.shape_cast %81 : vector<1x16x128xbf16> to vector<16x128xbf16>
    %83 = vector.shape_cast %80 : vector<16x128xbf16> to vector<1x16x128xbf16>
    tpu.vector_store %arg11[%c6, %c0_33, %c0_34], %83 {strides = array<i32>} : memref<8x16x128xbf16, #tpu.memory_space<vmem>>, vector<1x16x128xbf16>,
    %84 = vector.extract_strided_slice %13 {offsets = [7, 0, 0], sizes = [1, 16, 128], strides = [1, 1, 1]} : vector<8x16x128xf32> to vector<1x16x128xf32>
    %85 = vector.shape_cast %84 : vector<1x16x128xf32> to vector<16x128xf32>
    %86 = arith.truncf %79 : vector<16x128xf32> to vector<16x128xbf16>
    %cst_35 = arith.constant dense<0.000000e+00> : vector<16x128xf32>
    %87 = tpu.matmul %86, %4, %cst_35 {dimension_numbers = #tpu.dot_dimension_numbers<[1], [0], [0], [1], [0, 0, 1, 1], [], []>} : vector<16x128xbf16>, vector<128x128xbf16>, vector<16x128xf32> -> vector<16x128xf32>
    %88 = arith.addf %85, %87 : vector<16x128xf32>
    %89 = math.tanh %88 : vector<16x128xf32>
    %90 = arith.truncf %89 : vector<16x128xf32> to vector<16x128xbf16>
    %c7 = arith.constant 7 : index
    %c0_36 = arith.constant 0 : index
    %c0_37 = arith.constant 0 : index
    %91 = vector.load %arg11[%c7, %c0_36, %c0_37] : memref<8x16x128xbf16, #tpu.memory_space<vmem>>, vector<1x16x128xbf16>
    %92 = vector.shape_cast %91 : vector<1x16x128xbf16> to vector<16x128xbf16>
    %93 = vector.shape_cast %90 : vector<16x128xbf16> to vector<1x16x128xbf16>
    tpu.vector_store %arg11[%c7, %c0_36, %c0_37], %93 {strides = array<i32>} : memref<8x16x128xbf16, #tpu.memory_space<vmem>>, vector<1x16x128xbf16>,
    %c0_38 = arith.constant 0 : index
    %c0_39 = arith.constant 0 : index
    %c0_40 = arith.constant 0 : index
    %94 = vector.load %arg10[%c0_38, %c0_39, %c0_40] : memref<3x16x128xf32, #tpu.memory_space<vmem>>, vector<1x16x128xf32>
    %95 = vector.shape_cast %94 : vector<1x16x128xf32> to vector<16x128xf32>
    %96 = vector.shape_cast %89 : vector<16x128xf32> to vector<1x16x128xf32>
    tpu.vector_store %arg10[%c0_38, %c0_39, %c0_40], %96 {strides = array<i32>} : memref<3x16x128xf32, #tpu.memory_space<vmem>>, vector<1x16x128xf32>,
    %c0_41 = arith.constant 0 : index
    %c0_42 = arith.constant 0 : index
    %c0_43 = arith.constant 0 : index
    %97 = vector.load %arg4[%c0_41, %c0_42, %c0_43] : memref<2x128x128xbf16, #tpu.memory_space<vmem>>, vector<1x128x128xbf16>
    %98 = vector.shape_cast %97 : vector<1x128x128xbf16> to vector<128x128xbf16>
    %c1_44 = arith.constant 1 : index
    %c0_45 = arith.constant 0 : index
    %c0_46 = arith.constant 0 : index
    %99 = vector.load %arg2[%c1_44, %c0_45, %c0_46] : memref<3x16x128xf32, #tpu.memory_space<vmem>>, vector<1x16x128xf32>
    %100 = vector.shape_cast %99 : vector<1x16x128xf32> to vector<16x128xf32>
    %c1_47 = arith.constant 1 : index
    %c0_48 = arith.constant 0 : index
    %c0_49 = arith.constant 0 : index
    %101 = vector.load %arg5[%c1_47, %c0_48, %c0_49] : memref<3x128x128xbf16, #tpu.memory_space<vmem>>, vector<1x128x128xbf16>
    %102 = vector.shape_cast %101 : vector<1x128x128xbf16> to vector<128x128xbf16>
    %c1_50 = arith.constant 1 : index
    %c0_51 = arith.constant 0 : index
    %c0_52 = arith.constant 0 : index
    %103 = vector.load %arg6[%c1_50, %c0_51, %c0_52] : memref<3x1x128xf32, #tpu.memory_space<vmem>>, vector<1x1x128xf32>
    %104 = vector.shape_cast %103 : vector<1x1x128xf32> to vector<1x128xf32>
    %c0_53 = arith.constant 0 : index
    %c0_54 = arith.constant 0 : index
    %c0_55 = arith.constant 0 : index
    %105 = vector.load %arg11[%c0_53, %c0_54, %c0_55] : memref<8x16x128xbf16, #tpu.memory_space<vmem>>, vector<8x16x128xbf16>
    %106 = vector.shape_cast %105 : vector<8x16x128xbf16> to vector<128x128xbf16>
    %cst_56 = arith.constant dense<0.000000e+00> : vector<128x128xf32>
    %107 = tpu.matmul %106, %98, %cst_56 {dimension_numbers = #tpu.dot_dimension_numbers<[1], [0], [0], [1], [0, 0, 1, 1], [], []>} : vector<128x128xbf16>, vector<128x128xbf16>, vector<128x128xf32> -> vector<128x128xf32>
    %108 = vector.shape_cast %107 : vector<128x128xf32> to vector<8x16x128xf32>
    %109 = vector.shape_cast %104 : vector<1x128xf32> to vector<1x1x128xf32>
    %110 = vector.broadcast %109 : vector<1x1x128xf32> to vector<8x16x128xf32>
    %111 = arith.addf %108, %110 : vector<8x16x128xf32>
    %112 = vector.extract_strided_slice %111 {offsets = [0, 0, 0], sizes = [1, 16, 128], strides = [1, 1, 1]} : vector<8x16x128xf32> to vector<1x16x128xf32>
    %113 = vector.shape_cast %112 : vector<1x16x128xf32> to vector<16x128xf32>
    %114 = arith.truncf %100 : vector<16x128xf32> to vector<16x128xbf16>
    %cst_57 = arith.constant dense<0.000000e+00> : vector<16x128xf32>
    %115 = tpu.matmul %114, %102, %cst_57 {dimension_numbers = #tpu.dot_dimension_numbers<[1], [0], [0], [1], [0, 0, 1, 1], [], []>} : vector<16x128xbf16>, vector<128x128xbf16>, vector<16x128xf32> -> vector<16x128xf32>
    %116 = arith.addf %113, %115 : vector<16x128xf32>
    %117 = math.tanh %116 : vector<16x128xf32>
    %118 = arith.truncf %117 : vector<16x128xf32> to vector<16x128xbf16>
    %c0_58 = arith.constant 0 : index
    %c0_59 = arith.constant 0 : index
    %c0_60 = arith.constant 0 : index
    %119 = vector.load %arg11[%c0_58, %c0_59, %c0_60] : memref<8x16x128xbf16, #tpu.memory_space<vmem>>, vector<1x16x128xbf16>
    %120 = vector.shape_cast %119 : vector<1x16x128xbf16> to vector<16x128xbf16>
    %121 = vector.shape_cast %118 : vector<16x128xbf16> to vector<1x16x128xbf16>
    tpu.vector_store %arg11[%c0_58, %c0_59, %c0_60], %121 {strides = array<i32>} : memref<8x16x128xbf16, #tpu.memory_space<vmem>>, vector<1x16x128xbf16>,
    %122 = vector.extract_strided_slice %111 {offsets = [1, 0, 0], sizes = [1, 16, 128], strides = [1, 1, 1]} : vector<8x16x128xf32> to vector<1x16x128xf32>
    %123 = vector.shape_cast %122 : vector<1x16x128xf32> to vector<16x128xf32>
    %124 = arith.truncf %117 : vector<16x128xf32> to vector<16x128xbf16>
    %cst_61 = arith.constant dense<0.000000e+00> : vector<16x128xf32>
    %125 = tpu.matmul %124, %102, %cst_61 {dimension_numbers = #tpu.dot_dimension_numbers<[1], [0], [0], [1], [0, 0, 1, 1], [], []>} : vector<16x128xbf16>, vector<128x128xbf16>, vector<16x128xf32> -> vector<16x128xf32>
    %126 = arith.addf %123, %125 : vector<16x128xf32>
    %127 = math.tanh %126 : vector<16x128xf32>
    %128 = arith.truncf %127 : vector<16x128xf32> to vector<16x128xbf16>
    %c1_62 = arith.constant 1 : index
    %c0_63 = arith.constant 0 : index
    %c0_64 = arith.constant 0 : index
    %129 = vector.load %arg11[%c1_62, %c0_63, %c0_64] : memref<8x16x128xbf16, #tpu.memory_space<vmem>>, vector<1x16x128xbf16>
    %130 = vector.shape_cast %129 : vector<1x16x128xbf16> to vector<16x128xbf16>
    %131 = vector.shape_cast %128 : vector<16x128xbf16> to vector<1x16x128xbf16>
    tpu.vector_store %arg11[%c1_62, %c0_63, %c0_64], %131 {strides = array<i32>} : memref<8x16x128xbf16, #tpu.memory_space<vmem>>, vector<1x16x128xbf16>,
    %132 = vector.extract_strided_slice %111 {offsets = [2, 0, 0], sizes = [1, 16, 128], strides = [1, 1, 1]} : vector<8x16x128xf32> to vector<1x16x128xf32>
    %133 = vector.shape_cast %132 : vector<1x16x128xf32> to vector<16x128xf32>
    %134 = arith.truncf %127 : vector<16x128xf32> to vector<16x128xbf16>
    %cst_65 = arith.constant dense<0.000000e+00> : vector<16x128xf32>
    %135 = tpu.matmul %134, %102, %cst_65 {dimension_numbers = #tpu.dot_dimension_numbers<[1], [0], [0], [1], [0, 0, 1, 1], [], []>} : vector<16x128xbf16>, vector<128x128xbf16>, vector<16x128xf32> -> vector<16x128xf32>
    %136 = arith.addf %133, %135 : vector<16x128xf32>
    %137 = math.tanh %136 : vector<16x128xf32>
    %138 = arith.truncf %137 : vector<16x128xf32> to vector<16x128xbf16>
    %c2_66 = arith.constant 2 : index
    %c0_67 = arith.constant 0 : index
    %c0_68 = arith.constant 0 : index
    %139 = vector.load %arg11[%c2_66, %c0_67, %c0_68] : memref<8x16x128xbf16, #tpu.memory_space<vmem>>, vector<1x16x128xbf16>
    %140 = vector.shape_cast %139 : vector<1x16x128xbf16> to vector<16x128xbf16>
    %141 = vector.shape_cast %138 : vector<16x128xbf16> to vector<1x16x128xbf16>
    tpu.vector_store %arg11[%c2_66, %c0_67, %c0_68], %141 {strides = array<i32>} : memref<8x16x128xbf16, #tpu.memory_space<vmem>>, vector<1x16x128xbf16>,
    %142 = vector.extract_strided_slice %111 {offsets = [3, 0, 0], sizes = [1, 16, 128], strides = [1, 1, 1]} : vector<8x16x128xf32> to vector<1x16x128xf32>
    %143 = vector.shape_cast %142 : vector<1x16x128xf32> to vector<16x128xf32>
    %144 = arith.truncf %137 : vector<16x128xf32> to vector<16x128xbf16>
    %cst_69 = arith.constant dense<0.000000e+00> : vector<16x128xf32>
    %145 = tpu.matmul %144, %102, %cst_69 {dimension_numbers = #tpu.dot_dimension_numbers<[1], [0], [0], [1], [0, 0, 1, 1], [], []>} : vector<16x128xbf16>, vector<128x128xbf16>, vector<16x128xf32> -> vector<16x128xf32>
    %146 = arith.addf %143, %145 : vector<16x128xf32>
    %147 = math.tanh %146 : vector<16x128xf32>
    %148 = arith.truncf %147 : vector<16x128xf32> to vector<16x128xbf16>
    %c3_70 = arith.constant 3 : index
    %c0_71 = arith.constant 0 : index
    %c0_72 = arith.constant 0 : index
    %149 = vector.load %arg11[%c3_70, %c0_71, %c0_72] : memref<8x16x128xbf16, #tpu.memory_space<vmem>>, vector<1x16x128xbf16>
    %150 = vector.shape_cast %149 : vector<1x16x128xbf16> to vector<16x128xbf16>
    %151 = vector.shape_cast %148 : vector<16x128xbf16> to vector<1x16x128xbf16>
    tpu.vector_store %arg11[%c3_70, %c0_71, %c0_72], %151 {strides = array<i32>} : memref<8x16x128xbf16, #tpu.memory_space<vmem>>, vector<1x16x128xbf16>,
    %152 = vector.extract_strided_slice %111 {offsets = [4, 0, 0], sizes = [1, 16, 128], strides = [1, 1, 1]} : vector<8x16x128xf32> to vector<1x16x128xf32>
    %153 = vector.shape_cast %152 : vector<1x16x128xf32> to vector<16x128xf32>
    %154 = arith.truncf %147 : vector<16x128xf32> to vector<16x128xbf16>
    %cst_73 = arith.constant dense<0.000000e+00> : vector<16x128xf32>
    %155 = tpu.matmul %154, %102, %cst_73 {dimension_numbers = #tpu.dot_dimension_numbers<[1], [0], [0], [1], [0, 0, 1, 1], [], []>} : vector<16x128xbf16>, vector<128x128xbf16>, vector<16x128xf32> -> vector<16x128xf32>
    %156 = arith.addf %153, %155 : vector<16x128xf32>
    %157 = math.tanh %156 : vector<16x128xf32>
    %158 = arith.truncf %157 : vector<16x128xf32> to vector<16x128xbf16>
    %c4_74 = arith.constant 4 : index
    %c0_75 = arith.constant 0 : index
    %c0_76 = arith.constant 0 : index
    %159 = vector.load %arg11[%c4_74, %c0_75, %c0_76] : memref<8x16x128xbf16, #tpu.memory_space<vmem>>, vector<1x16x128xbf16>
    %160 = vector.shape_cast %159 : vector<1x16x128xbf16> to vector<16x128xbf16>
    %161 = vector.shape_cast %158 : vector<16x128xbf16> to vector<1x16x128xbf16>
    tpu.vector_store %arg11[%c4_74, %c0_75, %c0_76], %161 {strides = array<i32>} : memref<8x16x128xbf16, #tpu.memory_space<vmem>>, vector<1x16x128xbf16>,
    %162 = vector.extract_strided_slice %111 {offsets = [5, 0, 0], sizes = [1, 16, 128], strides = [1, 1, 1]} : vector<8x16x128xf32> to vector<1x16x128xf32>
    %163 = vector.shape_cast %162 : vector<1x16x128xf32> to vector<16x128xf32>
    %164 = arith.truncf %157 : vector<16x128xf32> to vector<16x128xbf16>
    %cst_77 = arith.constant dense<0.000000e+00> : vector<16x128xf32>
    %165 = tpu.matmul %164, %102, %cst_77 {dimension_numbers = #tpu.dot_dimension_numbers<[1], [0], [0], [1], [0, 0, 1, 1], [], []>} : vector<16x128xbf16>, vector<128x128xbf16>, vector<16x128xf32> -> vector<16x128xf32>
    %166 = arith.addf %163, %165 : vector<16x128xf32>
    %167 = math.tanh %166 : vector<16x128xf32>
    %168 = arith.truncf %167 : vector<16x128xf32> to vector<16x128xbf16>
    %c5_78 = arith.constant 5 : index
    %c0_79 = arith.constant 0 : index
    %c0_80 = arith.constant 0 : index
    %169 = vector.load %arg11[%c5_78, %c0_79, %c0_80] : memref<8x16x128xbf16, #tpu.memory_space<vmem>>, vector<1x16x128xbf16>
    %170 = vector.shape_cast %169 : vector<1x16x128xbf16> to vector<16x128xbf16>
    %171 = vector.shape_cast %168 : vector<16x128xbf16> to vector<1x16x128xbf16>
    tpu.vector_store %arg11[%c5_78, %c0_79, %c0_80], %171 {strides = array<i32>} : memref<8x16x128xbf16, #tpu.memory_space<vmem>>, vector<1x16x128xbf16>,
    %172 = vector.extract_strided_slice %111 {offsets = [6, 0, 0], sizes = [1, 16, 128], strides = [1, 1, 1]} : vector<8x16x128xf32> to vector<1x16x128xf32>
    %173 = vector.shape_cast %172 : vector<1x16x128xf32> to vector<16x128xf32>
    %174 = arith.truncf %167 : vector<16x128xf32> to vector<16x128xbf16>
    %cst_81 = arith.constant dense<0.000000e+00> : vector<16x128xf32>
    %175 = tpu.matmul %174, %102, %cst_81 {dimension_numbers = #tpu.dot_dimension_numbers<[1], [0], [0], [1], [0, 0, 1, 1], [], []>} : vector<16x128xbf16>, vector<128x128xbf16>, vector<16x128xf32> -> vector<16x128xf32>
    %176 = arith.addf %173, %175 : vector<16x128xf32>
    %177 = math.tanh %176 : vector<16x128xf32>
    %178 = arith.truncf %177 : vector<16x128xf32> to vector<16x128xbf16>
    %c6_82 = arith.constant 6 : index
    %c0_83 = arith.constant 0 : index
    %c0_84 = arith.constant 0 : index
    %179 = vector.load %arg11[%c6_82, %c0_83, %c0_84] : memref<8x16x128xbf16, #tpu.memory_space<vmem>>, vector<1x16x128xbf16>
    %180 = vector.shape_cast %179 : vector<1x16x128xbf16> to vector<16x128xbf16>
    %181 = vector.shape_cast %178 : vector<16x128xbf16> to vector<1x16x128xbf16>
    tpu.vector_store %arg11[%c6_82, %c0_83, %c0_84], %181 {strides = array<i32>} : memref<8x16x128xbf16, #tpu.memory_space<vmem>>, vector<1x16x128xbf16>,
    %182 = vector.extract_strided_slice %111 {offsets = [7, 0, 0], sizes = [1, 16, 128], strides = [1, 1, 1]} : vector<8x16x128xf32> to vector<1x16x128xf32>
    %183 = vector.shape_cast %182 : vector<1x16x128xf32> to vector<16x128xf32>
    %184 = arith.truncf %177 : vector<16x128xf32> to vector<16x128xbf16>
    %cst_85 = arith.constant dense<0.000000e+00> : vector<16x128xf32>
    %185 = tpu.matmul %184, %102, %cst_85 {dimension_numbers = #tpu.dot_dimension_numbers<[1], [0], [0], [1], [0, 0, 1, 1], [], []>} : vector<16x128xbf16>, vector<128x128xbf16>, vector<16x128xf32> -> vector<16x128xf32>
    %186 = arith.addf %183, %185 : vector<16x128xf32>
    %187 = math.tanh %186 : vector<16x128xf32>
    %188 = arith.truncf %187 : vector<16x128xf32> to vector<16x128xbf16>
    %c7_86 = arith.constant 7 : index
    %c0_87 = arith.constant 0 : index
    %c0_88 = arith.constant 0 : index
    %189 = vector.load %arg11[%c7_86, %c0_87, %c0_88] : memref<8x16x128xbf16, #tpu.memory_space<vmem>>, vector<1x16x128xbf16>
    %190 = vector.shape_cast %189 : vector<1x16x128xbf16> to vector<16x128xbf16>
    %191 = vector.shape_cast %188 : vector<16x128xbf16> to vector<1x16x128xbf16>
    tpu.vector_store %arg11[%c7_86, %c0_87, %c0_88], %191 {strides = array<i32>} : memref<8x16x128xbf16, #tpu.memory_space<vmem>>, vector<1x16x128xbf16>,
    %c1_89 = arith.constant 1 : index
    %c0_90 = arith.constant 0 : index
    %c0_91 = arith.constant 0 : index
    %192 = vector.load %arg10[%c1_89, %c0_90, %c0_91] : memref<3x16x128xf32, #tpu.memory_space<vmem>>, vector<1x16x128xf32>
    %193 = vector.shape_cast %192 : vector<1x16x128xf32> to vector<16x128xf32>
    %194 = vector.shape_cast %187 : vector<16x128xf32> to vector<1x16x128xf32>
    tpu.vector_store %arg10[%c1_89, %c0_90, %c0_91], %194 {strides = array<i32>} : memref<3x16x128xf32, #tpu.memory_space<vmem>>, vector<1x16x128xf32>,
    %c1_92 = arith.constant 1 : index
    %c0_93 = arith.constant 0 : index
    %c0_94 = arith.constant 0 : index
    %195 = vector.load %arg4[%c1_92, %c0_93, %c0_94] : memref<2x128x128xbf16, #tpu.memory_space<vmem>>, vector<1x128x128xbf16>
    %196 = vector.shape_cast %195 : vector<1x128x128xbf16> to vector<128x128xbf16>
    %c2_95 = arith.constant 2 : index
    %c0_96 = arith.constant 0 : index
    %c0_97 = arith.constant 0 : index
    %197 = vector.load %arg2[%c2_95, %c0_96, %c0_97] : memref<3x16x128xf32, #tpu.memory_space<vmem>>, vector<1x16x128xf32>
    %198 = vector.shape_cast %197 : vector<1x16x128xf32> to vector<16x128xf32>
    %c2_98 = arith.constant 2 : index
    %c0_99 = arith.constant 0 : index
    %c0_100 = arith.constant 0 : index
    %199 = vector.load %arg5[%c2_98, %c0_99, %c0_100] : memref<3x128x128xbf16, #tpu.memory_space<vmem>>, vector<1x128x128xbf16>
    %200 = vector.shape_cast %199 : vector<1x128x128xbf16> to vector<128x128xbf16>
    %c2_101 = arith.constant 2 : index
    %c0_102 = arith.constant 0 : index
    %c0_103 = arith.constant 0 : index
    %201 = vector.load %arg6[%c2_101, %c0_102, %c0_103] : memref<3x1x128xf32, #tpu.memory_space<vmem>>, vector<1x1x128xf32>
    %202 = vector.shape_cast %201 : vector<1x1x128xf32> to vector<1x128xf32>
    %c0_104 = arith.constant 0 : index
    %c0_105 = arith.constant 0 : index
    %c0_106 = arith.constant 0 : index
    %203 = vector.load %arg11[%c0_104, %c0_105, %c0_106] : memref<8x16x128xbf16, #tpu.memory_space<vmem>>, vector<8x16x128xbf16>
    %204 = vector.shape_cast %203 : vector<8x16x128xbf16> to vector<128x128xbf16>
    %cst_107 = arith.constant dense<0.000000e+00> : vector<128x128xf32>
    %205 = tpu.matmul %204, %196, %cst_107 {dimension_numbers = #tpu.dot_dimension_numbers<[1], [0], [0], [1], [0, 0, 1, 1], [], []>} : vector<128x128xbf16>, vector<128x128xbf16>, vector<128x128xf32> -> vector<128x128xf32>
    %206 = vector.shape_cast %205 : vector<128x128xf32> to vector<8x16x128xf32>
    %207 = vector.shape_cast %202 : vector<1x128xf32> to vector<1x1x128xf32>
    %208 = vector.broadcast %207 : vector<1x1x128xf32> to vector<8x16x128xf32>
    %209 = arith.addf %206, %208 : vector<8x16x128xf32>
    %210 = vector.extract_strided_slice %209 {offsets = [0, 0, 0], sizes = [1, 16, 128], strides = [1, 1, 1]} : vector<8x16x128xf32> to vector<1x16x128xf32>
    %211 = vector.shape_cast %210 : vector<1x16x128xf32> to vector<16x128xf32>
    %212 = arith.truncf %198 : vector<16x128xf32> to vector<16x128xbf16>
    %cst_108 = arith.constant dense<0.000000e+00> : vector<16x128xf32>
    %213 = tpu.matmul %212, %200, %cst_108 {dimension_numbers = #tpu.dot_dimension_numbers<[1], [0], [0], [1], [0, 0, 1, 1], [], []>} : vector<16x128xbf16>, vector<128x128xbf16>, vector<16x128xf32> -> vector<16x128xf32>
    %214 = arith.addf %211, %213 : vector<16x128xf32>
    %215 = math.tanh %214 : vector<16x128xf32>
    %216 = vector.extract_strided_slice %209 {offsets = [1, 0, 0], sizes = [1, 16, 128], strides = [1, 1, 1]} : vector<8x16x128xf32> to vector<1x16x128xf32>
    %217 = vector.shape_cast %216 : vector<1x16x128xf32> to vector<16x128xf32>
    %218 = arith.truncf %215 : vector<16x128xf32> to vector<16x128xbf16>
    %cst_109 = arith.constant dense<0.000000e+00> : vector<16x128xf32>
    %219 = tpu.matmul %218, %200, %cst_109 {dimension_numbers = #tpu.dot_dimension_numbers<[1], [0], [0], [1], [0, 0, 1, 1], [], []>} : vector<16x128xbf16>, vector<128x128xbf16>, vector<16x128xf32> -> vector<16x128xf32>
    %220 = arith.addf %217, %219 : vector<16x128xf32>
    %221 = math.tanh %220 : vector<16x128xf32>
    %222 = vector.extract_strided_slice %209 {offsets = [2, 0, 0], sizes = [1, 16, 128], strides = [1, 1, 1]} : vector<8x16x128xf32> to vector<1x16x128xf32>
    %223 = vector.shape_cast %222 : vector<1x16x128xf32> to vector<16x128xf32>
    %224 = arith.truncf %221 : vector<16x128xf32> to vector<16x128xbf16>
    %cst_110 = arith.constant dense<0.000000e+00> : vector<16x128xf32>
    %225 = tpu.matmul %224, %200, %cst_110 {dimension_numbers = #tpu.dot_dimension_numbers<[1], [0], [0], [1], [0, 0, 1, 1], [], []>} : vector<16x128xbf16>, vector<128x128xbf16>, vector<16x128xf32> -> vector<16x128xf32>
    %226 = arith.addf %223, %225 : vector<16x128xf32>
    %227 = math.tanh %226 : vector<16x128xf32>
    %228 = vector.extract_strided_slice %209 {offsets = [3, 0, 0], sizes = [1, 16, 128], strides = [1, 1, 1]} : vector<8x16x128xf32> to vector<1x16x128xf32>
    %229 = vector.shape_cast %228 : vector<1x16x128xf32> to vector<16x128xf32>
    %230 = arith.truncf %227 : vector<16x128xf32> to vector<16x128xbf16>
    %cst_111 = arith.constant dense<0.000000e+00> : vector<16x128xf32>
    %231 = tpu.matmul %230, %200, %cst_111 {dimension_numbers = #tpu.dot_dimension_numbers<[1], [0], [0], [1], [0, 0, 1, 1], [], []>} : vector<16x128xbf16>, vector<128x128xbf16>, vector<16x128xf32> -> vector<16x128xf32>
    %232 = arith.addf %229, %231 : vector<16x128xf32>
    %233 = math.tanh %232 : vector<16x128xf32>
    %234 = vector.extract_strided_slice %209 {offsets = [4, 0, 0], sizes = [1, 16, 128], strides = [1, 1, 1]} : vector<8x16x128xf32> to vector<1x16x128xf32>
    %235 = vector.shape_cast %234 : vector<1x16x128xf32> to vector<16x128xf32>
    %236 = arith.truncf %233 : vector<16x128xf32> to vector<16x128xbf16>
    %cst_112 = arith.constant dense<0.000000e+00> : vector<16x128xf32>
    %237 = tpu.matmul %236, %200, %cst_112 {dimension_numbers = #tpu.dot_dimension_numbers<[1], [0], [0], [1], [0, 0, 1, 1], [], []>} : vector<16x128xbf16>, vector<128x128xbf16>, vector<16x128xf32> -> vector<16x128xf32>
    %238 = arith.addf %235, %237 : vector<16x128xf32>
    %239 = math.tanh %238 : vector<16x128xf32>
    %240 = vector.extract_strided_slice %209 {offsets = [5, 0, 0], sizes = [1, 16, 128], strides = [1, 1, 1]} : vector<8x16x128xf32> to vector<1x16x128xf32>
    %241 = vector.shape_cast %240 : vector<1x16x128xf32> to vector<16x128xf32>
    %242 = arith.truncf %239 : vector<16x128xf32> to vector<16x128xbf16>
    %cst_113 = arith.constant dense<0.000000e+00> : vector<16x128xf32>
    %243 = tpu.matmul %242, %200, %cst_113 {dimension_numbers = #tpu.dot_dimension_numbers<[1], [0], [0], [1], [0, 0, 1, 1], [], []>} : vector<16x128xbf16>, vector<128x128xbf16>, vector<16x128xf32> -> vector<16x128xf32>
    %244 = arith.addf %241, %243 : vector<16x128xf32>
    %245 = math.tanh %244 : vector<16x128xf32>
    %246 = vector.extract_strided_slice %209 {offsets = [6, 0, 0], sizes = [1, 16, 128], strides = [1, 1, 1]} : vector<8x16x128xf32> to vector<1x16x128xf32>
    %247 = vector.shape_cast %246 : vector<1x16x128xf32> to vector<16x128xf32>
    %248 = arith.truncf %245 : vector<16x128xf32> to vector<16x128xbf16>
    %cst_114 = arith.constant dense<0.000000e+00> : vector<16x128xf32>
    %249 = tpu.matmul %248, %200, %cst_114 {dimension_numbers = #tpu.dot_dimension_numbers<[1], [0], [0], [1], [0, 0, 1, 1], [], []>} : vector<16x128xbf16>, vector<128x128xbf16>, vector<16x128xf32> -> vector<16x128xf32>
    %250 = arith.addf %247, %249 : vector<16x128xf32>
    %251 = math.tanh %250 : vector<16x128xf32>
    %252 = vector.extract_strided_slice %209 {offsets = [7, 0, 0], sizes = [1, 16, 128], strides = [1, 1, 1]} : vector<8x16x128xf32> to vector<1x16x128xf32>
    %253 = vector.shape_cast %252 : vector<1x16x128xf32> to vector<16x128xf32>
    %254 = arith.truncf %251 : vector<16x128xf32> to vector<16x128xbf16>
    %cst_115 = arith.constant dense<0.000000e+00> : vector<16x128xf32>
    %255 = tpu.matmul %254, %200, %cst_115 {dimension_numbers = #tpu.dot_dimension_numbers<[1], [0], [0], [1], [0, 0, 1, 1], [], []>} : vector<16x128xbf16>, vector<128x128xbf16>, vector<16x128xf32> -> vector<16x128xf32>
    %256 = arith.addf %253, %255 : vector<16x128xf32>
    %257 = math.tanh %256 : vector<16x128xf32>
    %c2_116 = arith.constant 2 : index
    %c0_117 = arith.constant 0 : index
    %c0_118 = arith.constant 0 : index
    %258 = vector.load %arg10[%c2_116, %c0_117, %c0_118] : memref<3x16x128xf32, #tpu.memory_space<vmem>>, vector<1x16x128xf32>
    %259 = vector.shape_cast %258 : vector<1x16x128xf32> to vector<16x128xf32>
    %260 = vector.shape_cast %257 : vector<16x128xf32> to vector<1x16x128xf32>
    tpu.vector_store %arg10[%c2_116, %c0_117, %c0_118], %260 {strides = array<i32>} : memref<3x16x128xf32, #tpu.memory_space<vmem>>, vector<1x16x128xf32>,
    %261 = arith.truncf %257 : vector<16x128xf32> to vector<16x128xbf16>
    %c0_119 = arith.constant 0 : index
    %c0_120 = arith.constant 0 : index
    %262 = vector.load %arg7[%c0_119, %c0_120] : memref<128x128xbf16, #tpu.memory_space<vmem>>, vector<128x128xbf16>
    %cst_121 = arith.constant dense<0.000000e+00> : vector<16x128xf32>
    %263 = tpu.matmul %261, %262, %cst_121 {dimension_numbers = #tpu.dot_dimension_numbers<[1], [0], [0], [1], [0, 0, 1, 1], [], []>} : vector<16x128xbf16>, vector<128x128xbf16>, vector<16x128xf32> -> vector<16x128xf32>
    %c0_122 = arith.constant 0 : index
    %c0_123 = arith.constant 0 : index
    %264 = vector.load %arg8[%c0_122, %c0_123] : memref<1x128xf32, #tpu.memory_space<vmem>>, vector<1x128xf32>
    %265 = vector.broadcast %264 : vector<1x128xf32> to vector<16x128xf32>
    %266 = arith.addf %263, %265 : vector<16x128xf32>
    %cst_124 = arith.constant 0.000000e+00 : f32
    %267 = vector.broadcast %cst_124 : f32 to vector<16x128xf32>
    %268 = arith.subf %267, %266 : vector<16x128xf32>
    %269 = math.exp %268 : vector<16x128xf32>
    %cst_125 = arith.constant 1.000000e+00 : f32
    %270 = vector.broadcast %cst_125 : f32 to vector<16x128xf32>
    %271 = arith.addf %270, %269 : vector<16x128xf32>
    %cst_126 = arith.constant 1.000000e+00 : f32
    %272 = vector.broadcast %cst_126 : f32 to vector<16x128xf32>
    %273 = arith.divf %272, %271 : vector<16x128xf32>
    %c0_127 = arith.constant 0 : index
    %c0_128 = arith.constant 0 : index
    %274 = vector.load %arg9[%c0_127, %c0_128] : memref<16x128xf32, #tpu.memory_space<vmem>>, vector<16x128xf32>
    tpu.vector_store %arg9[%c0_127, %c0_128], %273 {strides = array<i32>} : memref<16x128xf32, #tpu.memory_space<vmem>>, vector<16x128xf32>,
    return
  }
  func.func @transform_0(%arg0: i32) -> (i32, i32, i32) {
    %c0_i32 = arith.constant 0 : i32
    %c0_i32_0 = arith.constant 0 : i32
    %c0_i32_1 = arith.constant 0 : i32
    return %c0_i32, %arg0, %c0_i32_0 : i32, i32, i32
  }
  func.func @transform_1(%arg0: i32) -> (i32, i32, i32) {
    %c0_i32 = arith.constant 0 : i32
    %c0_i32_0 = arith.constant 0 : i32
    %c0_i32_1 = arith.constant 0 : i32
    return %c0_i32, %arg0, %c0_i32_0 : i32, i32, i32
  }
  func.func @transform_2(%arg0: i32) -> (i32, i32) {
    %c0_i32 = arith.constant 0 : i32
    %c0_i32_0 = arith.constant 0 : i32
    %c0_i32_1 = arith.constant 0 : i32
    return %c0_i32, %c0_i32_0 : i32, i32
  }
  func.func @transform_3(%arg0: i32) -> (i32, i32, i32) {
    %c0_i32 = arith.constant 0 : i32
    %c0_i32_0 = arith.constant 0 : i32
    %c0_i32_1 = arith.constant 0 : i32
    %c0_i32_2 = arith.constant 0 : i32
    return %c0_i32, %c0_i32_0, %c0_i32_1 : i32, i32, i32
  }
  func.func @transform_4(%arg0: i32) -> (i32, i32, i32) {
    %c0_i32 = arith.constant 0 : i32
    %c0_i32_0 = arith.constant 0 : i32
    %c0_i32_1 = arith.constant 0 : i32
    %c0_i32_2 = arith.constant 0 : i32
    return %c0_i32, %c0_i32_0, %c0_i32_1 : i32, i32, i32
  }
  func.func @transform_5(%arg0: i32) -> (i32, i32, i32) {
    %c0_i32 = arith.constant 0 : i32
    %c0_i32_0 = arith.constant 0 : i32
    %c0_i32_1 = arith.constant 0 : i32
    %c0_i32_2 = arith.constant 0 : i32
    return %c0_i32, %c0_i32_0, %c0_i32_1 : i32, i32, i32
  }
  func.func @transform_6(%arg0: i32) -> (i32, i32) {
    %c0_i32 = arith.constant 0 : i32
    %c0_i32_0 = arith.constant 0 : i32
    %c0_i32_1 = arith.constant 0 : i32
    return %c0_i32, %c0_i32_0 : i32, i32
  }
  func.func @transform_7(%arg0: i32) -> (i32, i32) {
    %c0_i32 = arith.constant 0 : i32
    %c0_i32_0 = arith.constant 0 : i32
    %c0_i32_1 = arith.constant 0 : i32
    return %c0_i32, %c0_i32_0 : i32, i32
  }
  func.func @transform_8(%arg0: i32) -> (i32, i32) {
    %c0_i32 = arith.constant 0 : i32
    %c0_i32_0 = arith.constant 0 : i32
    return %arg0, %c0_i32 : i32, i32
  }
  func.func @transform_9(%arg0: i32) -> (i32, i32, i32) {
    %c0_i32 = arith.constant 0 : i32
    %c0_i32_0 = arith.constant 0 : i32
    %c0_i32_1 = arith.constant 0 : i32
    return %c0_i32, %arg0, %c0_i32_0 : i32, i32, i32
  }
}

</mosaic_0001>

<bundles_post_ra>
// kernel: rnn_forward.1
= control target key start
LH: loop header
LB: loop body
LE: loop exit
PB: predicated region body
PF: predicated region fallthrough
CT: control target
= control target key end

     0   :  { %v3722_v0 = vmov 0.0   ;;  %vm3723_vm0 = vmmov 0   ;;  %s4654_s2 = inlined_call_operand.vmem [shape: bf16[128,128], index: 2, kind: input, shape index: {}]   ;;  %s4655_s4 = inlined_call_operand.vmem [shape: bf16[3,128,128], index: 4, kind: input, shape index: {}]   ;;  %s4656_s0 = inlined_call_operand.vmem [shape: bf16[8,16,128], index: 0, kind: input, shape index: {}]   ;;  %s4657_s1 = inlined_call_operand.vmem [shape: f32[3,16,128], index: 1, kind: input, shape index: {}]   ;;  %s4658_s5 = inlined_call_operand.vmem [shape: f32[3,1,128], index: 5, kind: input, shape index: {}]   ;;  %s4659_s3 = inlined_call_operand.vmem [shape: bf16[2,128,128], index: 3, kind: input, shape index: {}]   ;;  %s4660_s9 = inlined_call_operand.vmem [shape: f32[3,16,128], index: 9, kind: output, shape index: {1}]   ;;  %s4661_s6 = inlined_call_operand.vmem [shape: bf16[128,128], index: 6, kind: input, shape index: {}]   ;;  %s4662_s7 = inlined_call_operand.vmem [shape: f32[1,128], index: 7, kind: input, shape index: {}]   ;;  %s4663_s8 = inlined_call_operand.vmem [shape: f32[16,128], index: 8, kind: output, shape index: {0}]  }
   0x1   :  { %2972 = vmatprep.subr.bf16.mxu1 %v3722_v0  ;;  %v3538_v1 = vld [vmem:[%s4654_s2 + $0x38] sm:$0xff]   ;;  %2988 = vmatprep.mubr.msk.bf16.mxu1 %vm3723_vm0, %v3722_v0  ;;  %v3540_v3 = vld [vmem:[%s4654_s2 + $0x30] sm:$0xff]   ;;  %v3542_v5 = vld [vmem:[%s4654_s2 + $0x28] sm:$0xff]  }
   0x2   :  { %v3783_v2 = vld [vmem:[%s4655_s4 + $0x38] sm:$0xff]   ;;  %2940 = vmatprep.subr.bf16.mxu0 %v3538_v1  ;;  %v3792_v4 = vld [vmem:[%s4655_s4 + $0x30] sm:$0xff]   ;;  %v3802_v6 = vld [vmem:[%s4655_s4 + $0x28] sm:$0xff]  }
   0x3   :  { %2973 = vmatpush3.bf16.msra.mxu1 %v3783_v2  ;;  %2941 = vmatpush3.bf16.msra.mxu0 %v3538_v1  ;;  %v3544_v7 = vld [vmem:[%s4654_s2 + $0x20] sm:$0xff]   ;;  %v3546_v9 = vld [vmem:[%s4654_s2 + $0x18] sm:$0xff]   ;;  %v3548_v11 = vld [vmem:[%s4654_s2 + $0x10] sm:$0xff]  }
   0x4   :  { %2974 = vmatprep.subr.bf16.mxu1 %v3722_v0  ;;  %2942 = vmatprep.subr.bf16.mxu0 %v3540_v3  ;;  %v3812_v8 = vld [vmem:[%s4655_s4 + $0x20] sm:$0xff]   ;;  %v3821_v10 = vld [vmem:[%s4655_s4 + $0x18] sm:$0xff]   ;;  %v3835_v13 = vld [vmem:[%s4655_s4 + $0x10] sm:$0xff]  }
   0x5   :  { %v3554_v12 = vld [vmem:[%s4656_s0] sm:$0xff]   ;;  %v3550_v14 = vld [vmem:[%s4654_s2 + $0x8] sm:$0xff]   ;;  %v3556_v21 = vld [vmem:[%s4656_s0 + $0x10] sm:$0xff]  }
   0x6   :  { %2956 = vmatprep.mubr.bf16.mxu0 %v3554_v12  ;;  %v3844_v15 = vld [vmem:[%s4655_s4 + $0x8] sm:$0xff]   ;;  %v3552_v16 = vld [vmem:[%s4654_s2] sm:$0xff]   ;;  %v3557_v23 = vld [vmem:[%s4656_s0 + $0x18] sm:$0xff]  }
   0x7   :  { %2975 = vmatpush3.bf16.msra.mxu1 %v3792_v4  ;;  %2943 = vmatpush3.bf16.msra.mxu0 %v3540_v3  ;;  %v3854_v17 = vld [vmem:[%s4655_s4] sm:$0xff]   ;;  %v49_v19 = vld [vmem:[%s4657_s1 + $0x8] sm:$0xff]  ;;  %v3560_v26 = vld [vmem:[%s4656_s0 + $0x30] sm:$0xff]  }
   0x8   :  { %2976 = vmatprep.subr.bf16.mxu1 %v3722_v0  ;;  %2944 = vmatprep.subr.bf16.mxu0 %v3542_v5  ;;  %v48_v18 = vld [vmem:[%s4657_s1] sm:$0xff]  ;;  %v3555_v20 = vld [vmem:[%s4656_s0 + $0x8] sm:$0xff]   ;;  %v3561_v27 = vld [vmem:[%s4656_s0 + $0x38] sm:$0xff]  }
   0x9   :  { %v298_v22 = vpack.c.bf16 %v49_v19, %v48_v18  ;;  %v3558_v24 = vld [vmem:[%s4656_s0 + $0x20] sm:$0xff]   ;;  %v3559_v25 = vld [vmem:[%s4656_s0 + $0x28] sm:$0xff]  }
   0xa   :  { %v3927_v30 = vld [vmem:[%s4658_s5] ss:$0 sm:$0xff] }
   0xb   :  { %2977 = vmatpush3.bf16.msra.mxu1 %v3802_v6  ;;  %2945 = vmatpush3.bf16.msra.mxu0 %v3542_v5 }
   0xc   :  { %2978 = vmatprep.subr.bf16.mxu1 %v3722_v0  ;;  %2946 = vmatprep.subr.bf16.mxu0 %v3544_v7 }
   0xf   :  { %2979 = vmatpush3.bf16.msra.mxu1 %v3812_v8  ;;  %2947 = vmatpush3.bf16.msra.mxu0 %v3544_v7 }
  0x10   :  { %2980 = vmatprep.subr.bf16.mxu1 %v3722_v0  ;;  %2948 = vmatprep.subr.bf16.mxu0 %v3546_v9 }
  0x13   :  { %2981 = vmatpush3.bf16.msra.mxu1 %v3821_v10  ;;  %2949 = vmatpush3.bf16.msra.mxu0 %v3546_v9 }
  0x14   :  { %2982 = vmatprep.subr.bf16.mxu1 %v3722_v0  ;;  %2950 = vmatprep.subr.bf16.mxu0 %v3548_v11 }
  0x17   :  { %2983 = vmatpush3.bf16.msra.mxu1 %v3835_v13  ;;  %2951 = vmatpush3.bf16.msra.mxu0 %v3548_v11 }
  0x18   :  { %2984 = vmatprep.subr.bf16.mxu1 %v3722_v0  ;;  %2952 = vmatprep.subr.bf16.mxu0 %v3550_v14 }
  0x1b   :  { %2985 = vmatpush3.bf16.msra.mxu1 %v3844_v15  ;;  %2953 = vmatpush3.bf16.msra.mxu0 %v3550_v14 }
  0x1c   :  { %2986 = vmatprep.subr.bf16.mxu1 %v3722_v0  ;;  %2954 = vmatprep.subr.bf16.mxu0 %v3552_v16 }
  0x1f   :  { %2987 = vmatpush3.bf16.msra.mxu1 %v3854_v17  ;;  %2955 = vmatpush3.bf16.msra.mxu0 %v3552_v16 }
  0x20   :  { %2992 = vmatprep.subr.bf16.mxu0 %v3722_v0  ;;  %3012 = vmatprep.subr.bf16.mxu1 %v3722_v0 }
  0x22   :  { %2989 = vmatmul.mubr.bf16.vlgmr.msra.gmra.mxu1 %v298_v22  ;;  %2957 = vmatmul.mubr.bf16.vlgmr.msra.gmra.mxu0 %v3555_v20 }
  0x23   :  { %2993 = vmatpush3.bf16.msra.mxu0 %v3783_v2  ;;  %2960 = vmatprep.mubr.bf16.mxu0 %v3556_v21 }
  0x24   :  { %2994 = vmatprep.subr.bf16.mxu0 %v3722_v0  ;;  %3013 = vmatpush3.bf16.msra.mxu1 %v3783_v2 }
  0x25   :  { %3014 = vmatprep.subr.bf16.mxu1 %v3722_v0  ;;  %3028 = vmatprep.mubr.msk.bf16.mxu1 %vm3723_vm0, %v3722_v0 }
  0x27   :  { %2995 = vmatpush3.bf16.msra.mxu0 %v3792_v4 }
  0x28   :  { %2996 = vmatprep.subr.bf16.mxu0 %v3722_v0  ;;  %3015 = vmatpush3.bf16.msra.mxu1 %v3792_v4 }
  0x29   :  { %3016 = vmatprep.subr.bf16.mxu1 %v3722_v0 }
  0x2a   :  { %2961 = vmatmul.mubr.bf16.gmra.mxu0 %v3557_v23 }
  0x2b   :  { %2997 = vmatpush3.bf16.msra.mxu0 %v3802_v6  ;;  %2964 = vmatprep.mubr.bf16.mxu0 %v3558_v24 }
  0x2c   :  { %2998 = vmatprep.subr.bf16.mxu0 %v3722_v0  ;;  %3017 = vmatpush3.bf16.msra.mxu1 %v3802_v6 }
  0x2d   :  { %3018 = vmatprep.subr.bf16.mxu1 %v3722_v0 }
  0x2f   :  { %2999 = vmatpush3.bf16.msra.mxu0 %v3812_v8 }
  0x30   :  { %3000 = vmatprep.subr.bf16.mxu0 %v3722_v0  ;;  %3019 = vmatpush3.bf16.msra.mxu1 %v3812_v8 }
  0x31   :  { %3020 = vmatprep.subr.bf16.mxu1 %v3722_v0 }
  0x32   :  { %2965 = vmatmul.mubr.bf16.gmra.mxu0 %v3559_v25 }
  0x33   :  { %3001 = vmatpush3.bf16.msra.mxu0 %v3821_v10  ;;  %2968 = vmatprep.mubr.bf16.mxu0 %v3560_v26 }
  0x34   :  { %3002 = vmatprep.subr.bf16.mxu0 %v3722_v0  ;;  %3021 = vmatpush3.bf16.msra.mxu1 %v3821_v10 }
  0x35   :  { %3022 = vmatprep.subr.bf16.mxu1 %v3722_v0 }
  0x37   :  { %3003 = vmatpush3.bf16.msra.mxu0 %v3835_v13 }
  0x38   :  { %3004 = vmatprep.subr.bf16.mxu0 %v3722_v0  ;;  %3023 = vmatpush3.bf16.msra.mxu1 %v3835_v13 }
  0x39   :  { %3024 = vmatprep.subr.bf16.mxu1 %v3722_v0 }
  0x3a   :  { %2969 = vmatmul.mubr.bf16.gmra.mxu0 %v3561_v27 }
  0x3b   :  { %3005 = vmatpush3.bf16.msra.mxu0 %v3844_v15  ;;  %3008 = vmatprep.mubr.msk.bf16.mxu0 %vm3723_vm0, %v3722_v0 }
  0x3c   :  { %3006 = vmatprep.subr.bf16.mxu0 %v3722_v0  ;;  %3025 = vmatpush3.bf16.msra.mxu1 %v3844_v15 }
  0x3d   :  { %3026 = vmatprep.subr.bf16.mxu1 %v3722_v0 }
  0x3f   :  { %3007 = vmatpush3.bf16.msra.mxu0 %v3854_v17 }
  0x40   :  { %3027 = vmatpush3.bf16.msra.mxu1 %v3854_v17  ;;  %3032 = vmatprep.subr.bf16.mxu0 %v3722_v0 }
  0x41   :  { %3052 = vmatprep.subr.bf16.mxu1 %v3722_v0 }
  0xe2   :  { %v381_v28 = vpop.f32.mrf.mxu1  ;;  %v2958_v29 = vpop.f32.mrf.mxu0 }
  0xe3   :  { %v284_v56 = vadd.f32 %v2958_v29, %v3927_v30 }
  0xe4   :  { %v2990_v31 = vpop.f32.mrf.mxu1  ;;  %v213_v32 = vpop.f32.mrf.mxu0 }
  0xe5   :  { %v282_v33 = vadd.f32 %v3927_v30, %v213_v32 }
  0xe6   :  { %v384_v34 = vpop.f32.mrf.mxu1  ;;  %v2959_v35 = vpop.f32.mrf.mxu0 }
  0xe7   :  { %v388_v36 = vadd.f32 %v381_v28, %v282_v33  ;;  %v285_v60 = vadd.f32 %v2959_v35, %v3927_v30 }
  0xe8   :  { %v2991_v37 = vpop.f32.mrf.mxu1  ;;  %v216_v38 = vpop.f32.mrf.mxu0 }
  0xe9   :  { %v283_v39 = vadd.f32 %v3927_v30, %v216_v38  ;;  %3618 = vtanh.f32 %v388_v36 }
  0xea   :  { %v3949_v44 = vpop.f32.mrf.mxu0 }
  0xeb   :  { %v389_v40 = vadd.f32 %v384_v34, %v283_v39  ;;  %v288_v23 = vadd.f32 %v3949_v44, %v3927_v30 }
  0xec   :  { %v229_v45 = vpop.f32.mrf.mxu0 }
  0xed   :  { %3620 = vtanh.f32 %v389_v40  ;;  %v286_v7 = vadd.f32 %v3927_v30, %v229_v45 }
  0xee   :  { %v3951_v46 = vpop.f32.mrf.mxu0 }
  0xef   :  { %v289_v27 = vadd.f32 %v3951_v46, %v3927_v30 }
  0xf0   :  { %v232_v47 = vpop.f32.mrf.mxu0 }
  0xf1   :  { %v287_v14 = vadd.f32 %v3927_v30, %v232_v47 }
  0xf2   :  { %v3953_v48 = vpop.f32.mrf.mxu0 }
  0xf4   :  { %v3955_v49 = vpop.f32.mrf.mxu0 }
  0xf5   :  { %v290_v35 = vadd.f32 %v3927_v30, %v3955_v49 }
  0xf6   :  { %v3619_v41 = vpop.eup %3618  ;;  %v3957_v50 = vpop.f32.mrf.mxu0 }
  0xf8   :  { %v3959_v51 = vpop.f32.mrf.mxu0 }
  0xf9   :  { %v291_v39 = vadd.f32 %v3927_v30, %v3959_v51 }
  0xfa   :  { %v3621_v42 = vpop.eup %3620  ;;  %v3961_v52 = vpop.f32.mrf.mxu0 }
  0xfb   :  { %v392_v43 = vpack.c.bf16 %v3621_v42, %v3619_v41 }
  0xfc   :  { %v3963_v53 = vpop.f32.mrf.mxu0 }
  0xfd   :  { %2591 = vst [vmem:[#allocation2] sm:$0xff] %v392_v43   ;;  %3009 = vmatmul.mubr.bf16.vlgmr.msra.gmra.mxu0 %v392_v43 }
  0xfe   :  { %3033 = vmatpush3.bf16.msra.mxu0 %v3783_v2  ;;  %3048 = vmatprep.mubr.msk.bf16.mxu0 %vm3723_vm0, %v3722_v0  ;;  %v3965_v54 = vpop.f32.mrf.mxu0 }
  0xff   :  { %3034 = vmatprep.subr.bf16.mxu0 %v3722_v0 }
 0x100   :  { %v3967_v55 = vpop.f32.mrf.mxu0 }
 0x102   :  { %3035 = vmatpush3.bf16.msra.mxu0 %v3792_v4 }
 0x103   :  { %3036 = vmatprep.subr.bf16.mxu0 %v3722_v0 }
 0x106   :  { %3037 = vmatpush3.bf16.msra.mxu0 %v3802_v6 }
 0x107   :  { %3038 = vmatprep.subr.bf16.mxu0 %v3722_v0 }
 0x10a   :  { %3039 = vmatpush3.bf16.msra.mxu0 %v3812_v8 }
 0x10b   :  { %3040 = vmatprep.subr.bf16.mxu0 %v3722_v0 }
 0x10e   :  { %3041 = vmatpush3.bf16.msra.mxu0 %v3821_v10 }
 0x10f   :  { %3042 = vmatprep.subr.bf16.mxu0 %v3722_v0 }
 0x112   :  { %3043 = vmatpush3.bf16.msra.mxu0 %v3835_v13 }
 0x113   :  { %3044 = vmatprep.subr.bf16.mxu0 %v3722_v0 }
 0x116   :  { %3045 = vmatpush3.bf16.msra.mxu0 %v3844_v15 }
 0x117   :  { %3046 = vmatprep.subr.bf16.mxu0 %v3722_v0 }
 0x11a   :  { %3047 = vmatpush3.bf16.msra.mxu0 %v3854_v17 }
 0x11b   :  { %3072 = vmatprep.subr.bf16.mxu0 %v3722_v0 }
 0x1bd   :  { %v436_v57 = vpop.f32.mrf.mxu0 }
 0x1be   :  { %v443_v58 = vadd.f32 %v436_v57, %v284_v56  ;;  %v3564_v56 = vld [vmem:[%s4659_s3 + $0x30] sm:$0xff]   ;;  %v3563_v57 = vld [vmem:[#allocation2] sm:$0xff]  }
 0x1bf   :  { %v3010_v59 = vpop.f32.mrf.mxu0 }
 0x1c0   :  { %3622 = vtanh.f32 %v443_v58  ;;  %v3567_v58 = vld [vmem:[%s4659_s3 + $0x18] sm:$0xff]   ;;  %v3568_v59 = vld [vmem:[%s4659_s3 + $0x10] sm:$0xff]  }
 0x1c1   :  { %v439_v61 = vpop.f32.mrf.mxu0 }
 0x1c2   :  { %v444_v62 = vadd.f32 %v439_v61, %v285_v60  ;;  %v3569_v60 = vld [vmem:[%s4659_s3 + $0x8] sm:$0xff]   ;;  %v3570_v61 = vld [vmem:[%s4659_s3] sm:$0xff]  }
 0x1c3   :  { %v3011_v63 = vpop.f32.mrf.mxu0 }
 0x1c4   :  { %3624 = vtanh.f32 %v444_v62 }
 0x1cd   :  { %v3623_v1 = vpop.eup %3622 }
 0x1d1   :  { %v3625_v3 = vpop.eup %3624 }
 0x1d2   :  { %v447_v5 = vpack.c.bf16 %v3625_v3, %v3623_v1 }
 0x1d4   :  { %2596 = vst [vmem:[#allocation2 + $0x8] sm:$0xff] %v447_v5   ;;  %3029 = vmatmul.mubr.bf16.vlgmr.msra.gmra.mxu1 %v447_v5 }
 0x1d5   :  { %3053 = vmatpush3.bf16.msra.mxu1 %v3783_v2  ;;  %3068 = vmatprep.mubr.msk.bf16.mxu1 %vm3723_vm0, %v3722_v0 }
 0x1d6   :  { %3054 = vmatprep.subr.bf16.mxu1 %v3722_v0 }
 0x1d9   :  { %3055 = vmatpush3.bf16.msra.mxu1 %v3792_v4 }
 0x1da   :  { %3056 = vmatprep.subr.bf16.mxu1 %v3722_v0 }
 0x1db   :  { %v3571_v62 = vld [vmem:[#allocation2 + $0x8] sm:$0xff]  }
 0x1dd   :  { %3057 = vmatpush3.bf16.msra.mxu1 %v3802_v6 }
 0x1de   :  { %3058 = vmatprep.subr.bf16.mxu1 %v3722_v0 }
 0x1e1   :  { %3059 = vmatpush3.bf16.msra.mxu1 %v3812_v8 }
 0x1e2   :  { %3060 = vmatprep.subr.bf16.mxu1 %v3722_v0 }
 0x1e5   :  { %3061 = vmatpush3.bf16.msra.mxu1 %v3821_v10 }
 0x1e6   :  { %3062 = vmatprep.subr.bf16.mxu1 %v3722_v0 }
 0x1e9   :  { %3063 = vmatpush3.bf16.msra.mxu1 %v3835_v13 }
 0x1ea   :  { %3064 = vmatprep.subr.bf16.mxu1 %v3722_v0 }
 0x1ed   :  { %3065 = vmatpush3.bf16.msra.mxu1 %v3844_v15 }
 0x1ee   :  { %3066 = vmatprep.subr.bf16.mxu1 %v3722_v0 }
 0x1f1   :  { %3067 = vmatpush3.bf16.msra.mxu1 %v3854_v17 }
 0x1f2   :  { %3092 = vmatprep.subr.bf16.mxu1 %v3722_v0 }
 0x294   :  { %v492_v9 = vpop.f32.mrf.mxu1 }
 0x295   :  { %v499_v11 = vadd.f32 %v492_v9, %v286_v7  ;;  %v4084_v7 = vld [vmem:[%s4655_s4 + $0x78] sm:$0xff]   ;;  %v4091_v9 = vld [vmem:[%s4655_s4 + $0x70] sm:$0xff]  }
 0x296   :  { %v3030_v12 = vpop.f32.mrf.mxu1 }
 0x297   :  { %3626 = vtanh.f32 %v499_v11  ;;  %v4098_v11 = vld [vmem:[%s4655_s4 + $0x68] sm:$0xff]   ;;  %v4105_v12 = vld [vmem:[%s4655_s4 + $0x60] sm:$0xff]  }
 0x298   :  { %v495_v16 = vpop.f32.mrf.mxu1 }
 0x299   :  { %v500_v18 = vadd.f32 %v495_v16, %v287_v14  ;;  %v4112_v14 = vld [vmem:[%s4655_s4 + $0x58] sm:$0xff]   ;;  %v4119_v16 = vld [vmem:[%s4655_s4 + $0x50] sm:$0xff]  }
 0x29a   :  { %v3031_v19 = vpop.f32.mrf.mxu1 }
 0x29b   :  { %3628 = vtanh.f32 %v500_v18  ;;  %v4126_v18 = vld [vmem:[%s4655_s4 + $0x48] sm:$0xff]   ;;  %v4133_v19 = vld [vmem:[%s4655_s4 + $0x40] sm:$0xff]  }
 0x2a4   :  { %v3627_v20 = vpop.eup %3626 }
 0x2a8   :  { %v3629_v21 = vpop.eup %3628 }
 0x2a9   :  { %v503_v22 = vpack.c.bf16 %v3629_v21, %v3627_v20  ;;  %v294_v20 = vadd.f32 %v3927_v30, %v3963_v53 }
 0x2ab   :  { %2601 = vst [vmem:[#allocation2 + $0x10] sm:$0xff] %v503_v22   ;;  %3049 = vmatmul.mubr.bf16.vlgmr.msra.gmra.mxu0 %v503_v22 }
 0x2ac   :  { %3073 = vmatpush3.bf16.msra.mxu0 %v3783_v2  ;;  %3088 = vmatprep.mubr.msk.bf16.mxu0 %vm3723_vm0, %v3722_v0 }
 0x2ad   :  { %3074 = vmatprep.subr.bf16.mxu0 %v3722_v0 }
 0x2b0   :  { %3075 = vmatpush3.bf16.msra.mxu0 %v3792_v4 }
 0x2b1   :  { %3076 = vmatprep.subr.bf16.mxu0 %v3722_v0 }
 0x2b2   :  { %v3572_v63 = vld [vmem:[#allocation2 + $0x10] sm:$0xff]  }
 0x2b4   :  { %3077 = vmatpush3.bf16.msra.mxu0 %v3802_v6 }
 0x2b5   :  { %3078 = vmatprep.subr.bf16.mxu0 %v3722_v0 }
 0x2b8   :  { %3079 = vmatpush3.bf16.msra.mxu0 %v3812_v8 }
 0x2b9   :  { %3080 = vmatprep.subr.bf16.mxu0 %v3722_v0 }
 0x2bc   :  { %3081 = vmatpush3.bf16.msra.mxu0 %v3821_v10 }
 0x2bd   :  { %3082 = vmatprep.subr.bf16.mxu0 %v3722_v0 }
 0x2c0   :  { %3083 = vmatpush3.bf16.msra.mxu0 %v3835_v13 }
 0x2c1   :  { %3084 = vmatprep.subr.bf16.mxu0 %v3722_v0 }
 0x2c4   :  { %3085 = vmatpush3.bf16.msra.mxu0 %v3844_v15 }
 0x2c5   :  { %3086 = vmatprep.subr.bf16.mxu0 %v3722_v0 }
 0x2c8   :  { %3087 = vmatpush3.bf16.msra.mxu0 %v3854_v17 }
 0x2c9   :  { %3112 = vmatprep.subr.bf16.mxu0 %v3722_v0 }
 0x36b   :  { %v548_v24 = vpop.f32.mrf.mxu0 }
 0x36c   :  { %v555_v25 = vadd.f32 %v548_v24, %v288_v23  ;;  %v295_v24 = vadd.f32 %v3927_v30, %v3967_v55  ;;  %v2422_v55 = vld [vmem:[%s4657_s1 + $0x10] sm:$0xff] }
 0x36d   :  { %v3050_v26 = vpop.f32.mrf.mxu0 }
 0x36e   :  { %3630 = vtanh.f32 %v555_v25 }
 0x36f   :  { %v551_v28 = vpop.f32.mrf.mxu0 }
 0x370   :  { %v556_v29 = vadd.f32 %v551_v28, %v289_v27 }
 0x371   :  { %v3051_v31 = vpop.f32.mrf.mxu0 }
 0x372   :  { %3632 = vtanh.f32 %v556_v29 }
 0x37b   :  { %v3631_v32 = vpop.eup %3630 }
 0x37f   :  { %v3633_v33 = vpop.eup %3632 }
 0x380   :  { %v559_v34 = vpack.c.bf16 %v3633_v33, %v3631_v32  ;;  %v2423_v32 = vld [vmem:[%s4657_s1 + $0x18] sm:$0xff] }
 0x381   :  { %v1065_v33 = vpack.c.bf16 %v2423_v32, %v2422_v55 }
 0x382   :  { %2606 = vst [vmem:[#allocation2 + $0x18] sm:$0xff] %v559_v34   ;;  %3069 = vmatmul.mubr.bf16.vlgmr.msra.gmra.mxu1 %v559_v34  ;;  %v296_v34 = vadd.f32 %v3961_v52, %v3927_v30 }
 0x383   :  { %3093 = vmatpush3.bf16.msra.mxu1 %v3783_v2  ;;  %3108 = vmatprep.mubr.msk.bf16.mxu1 %vm3723_vm0, %v3722_v0 }
 0x384   :  { %3094 = vmatprep.subr.bf16.mxu1 %v3722_v0 }
 0x387   :  { %3095 = vmatpush3.bf16.msra.mxu1 %v3792_v4 }
 0x388   :  { %3096 = vmatprep.subr.bf16.mxu1 %v3722_v0 }
 0x389   :  { %v3573_v1 = vld [vmem:[#allocation2 + $0x18] sm:$0xff]  }
 0x38b   :  { %3097 = vmatpush3.bf16.msra.mxu1 %v3802_v6 }
 0x38c   :  { %3098 = vmatprep.subr.bf16.mxu1 %v3722_v0 }
 0x38f   :  { %3099 = vmatpush3.bf16.msra.mxu1 %v3812_v8 }
 0x390   :  { %3100 = vmatprep.subr.bf16.mxu1 %v3722_v0 }
 0x393   :  { %3101 = vmatpush3.bf16.msra.mxu1 %v3821_v10 }
 0x394   :  { %3102 = vmatprep.subr.bf16.mxu1 %v3722_v0 }
 0x397   :  { %3103 = vmatpush3.bf16.msra.mxu1 %v3835_v13 }
 0x398   :  { %3104 = vmatprep.subr.bf16.mxu1 %v3722_v0 }
 0x39b   :  { %3105 = vmatpush3.bf16.msra.mxu1 %v3844_v15 }
 0x39c   :  { %3106 = vmatprep.subr.bf16.mxu1 %v3722_v0 }
 0x39f   :  { %3107 = vmatpush3.bf16.msra.mxu1 %v3854_v17 }
 0x442   :  { %v604_v36 = vpop.f32.mrf.mxu1 }
 0x443   :  { %v611_v37 = vadd.f32 %v604_v36, %v290_v35 }
 0x444   :  { %v3070_v38 = vpop.f32.mrf.mxu1 }
 0x445   :  { %3634 = vtanh.f32 %v611_v37  ;;  %v297_v38 = vadd.f32 %v3965_v54, %v3927_v30 }
 0x446   :  { %v607_v40 = vpop.f32.mrf.mxu1 }
 0x447   :  { %v612_v41 = vadd.f32 %v607_v40, %v291_v39 }
 0x448   :  { %v3071_v42 = vpop.f32.mrf.mxu1 }
 0x449   :  { %3636 = vtanh.f32 %v612_v41 }
 0x452   :  { %v3635_v43 = vpop.eup %3634 }
 0x456   :  { %v3637_v44 = vpop.eup %3636 }
 0x457   :  { %v615_v45 = vpack.c.bf16 %v3637_v44, %v3635_v43 }
 0x459   :  { %2611 = vst [vmem:[#allocation2 + $0x20] sm:$0xff] %v615_v45   ;;  %3089 = vmatmul.mubr.bf16.vlgmr.msra.gmra.mxu0 %v615_v45 }
 0x45a   :  { %3113 = vmatpush3.bf16.msra.mxu0 %v3783_v2  ;;  %3128 = vmatprep.mubr.msk.bf16.mxu0 %vm3723_vm0, %v3722_v0  ;;  %v3562_v2 = vld [vmem:[%s4659_s3 + $0x38] sm:$0xff]  }
 0x45b   :  { %3114 = vmatprep.subr.bf16.mxu0 %v3722_v0  ;;  %3132 = vmatprep.subr.bf16.mxu1 %v3562_v2 }
 0x45e   :  { %3115 = vmatpush3.bf16.msra.mxu0 %v3792_v4  ;;  %v292_v4 = vadd.f32 %v3953_v48, %v3927_v30  ;;  %v3565_v48 = vld [vmem:[%s4659_s3 + $0x28] sm:$0xff]  }
 0x45f   :  { %3116 = vmatprep.subr.bf16.mxu0 %v3722_v0 }
 0x460   :  { %v3574_v3 = vld [vmem:[#allocation2 + $0x20] sm:$0xff]  }
 0x462   :  { %3117 = vmatpush3.bf16.msra.mxu0 %v3802_v6 }
 0x463   :  { %3118 = vmatprep.subr.bf16.mxu0 %v3722_v0 }
 0x466   :  { %3119 = vmatpush3.bf16.msra.mxu0 %v3812_v8 }
 0x467   :  { %3120 = vmatprep.subr.bf16.mxu0 %v3722_v0 }
 0x46a   :  { %3121 = vmatpush3.bf16.msra.mxu0 %v3821_v10 }
 0x46b   :  { %3122 = vmatprep.subr.bf16.mxu0 %v3722_v0 }
 0x46e   :  { %3123 = vmatpush3.bf16.msra.mxu0 %v3835_v13  ;;  %v293_v13 = vadd.f32 %v3957_v50, %v3927_v30  ;;  %v3566_v50 = vld [vmem:[%s4659_s3 + $0x20] sm:$0xff]  }
 0x46f   :  { %3124 = vmatprep.subr.bf16.mxu0 %v3722_v0 }
 0x472   :  { %3125 = vmatpush3.bf16.msra.mxu0 %v3844_v15 }
 0x473   :  { %3126 = vmatprep.subr.bf16.mxu0 %v3722_v0 }
 0x476   :  { %3127 = vmatpush3.bf16.msra.mxu0 %v3854_v17 }
 0x477   :  { %3164 = vmatprep.subr.bf16.mxu0 %v3722_v0 }
 0x519   :  { %v660_v6 = vpop.f32.mrf.mxu0 }
 0x51a   :  { %v667_v8 = vadd.f32 %v660_v6, %v292_v4 }
 0x51b   :  { %v3090_v10 = vpop.f32.mrf.mxu0 }
 0x51c   :  { %3638 = vtanh.f32 %v667_v8 }
 0x51d   :  { %v663_v15 = vpop.f32.mrf.mxu0 }
 0x51e   :  { %v668_v46 = vadd.f32 %v663_v15, %v293_v13 }
 0x51f   :  { %v3091_v17 = vpop.f32.mrf.mxu0 }
 0x520   :  { %3640 = vtanh.f32 %v668_v46 }
 0x529   :  { %v3639_v47 = vpop.eup %3638 }
 0x52d   :  { %v3641_v49 = vpop.eup %3640 }
 0x52e   :  { %v671_v51 = vpack.c.bf16 %v3641_v49, %v3639_v47 }
 0x530   :  { %2616 = vst [vmem:[#allocation2 + $0x28] sm:$0xff] %v671_v51   ;;  %3109 = vmatmul.mubr.bf16.vlgmr.msra.gmra.mxu1 %v671_v51 }
 0x531   :  { %3133 = vmatpush3.bf16.msra.mxu1 %v3562_v2  ;;  %3148 = vmatprep.mubr.bf16.mxu1 %v3563_v57  ;;  %v4196_v2 = vld [vmem:[%s4658_s5 + $0x1] ss:$0 sm:$0xff] }
 0x532   :  { %3134 = vmatprep.subr.bf16.mxu1 %v3564_v56 }
 0x535   :  { %3135 = vmatpush3.bf16.msra.mxu1 %v3564_v56 }
 0x536   :  { %3136 = vmatprep.subr.bf16.mxu1 %v3565_v48 }
 0x537   :  { %v3575_v5 = vld [vmem:[#allocation2 + $0x28] sm:$0xff]  }
 0x539   :  { %3137 = vmatpush3.bf16.msra.mxu1 %v3565_v48 }
 0x53a   :  { %3138 = vmatprep.subr.bf16.mxu1 %v3566_v50 }
 0x53d   :  { %3139 = vmatpush3.bf16.msra.mxu1 %v3566_v50 }
 0x53e   :  { %3140 = vmatprep.subr.bf16.mxu1 %v3567_v58 }
 0x541   :  { %3141 = vmatpush3.bf16.msra.mxu1 %v3567_v58 }
 0x542   :  { %3142 = vmatprep.subr.bf16.mxu1 %v3568_v59 }
 0x545   :  { %3143 = vmatpush3.bf16.msra.mxu1 %v3568_v59 }
 0x546   :  { %3144 = vmatprep.subr.bf16.mxu1 %v3569_v60 }
 0x549   :  { %3145 = vmatpush3.bf16.msra.mxu1 %v3569_v60 }
 0x54a   :  { %3146 = vmatprep.subr.bf16.mxu1 %v3570_v61 }
 0x54d   :  { %3147 = vmatpush3.bf16.msra.mxu1 %v3570_v61 }
 0x54e   :  { %3184 = vmatprep.subr.bf16.mxu1 %v3722_v0 }
 0x550   :  { %3149 = vmatmul.mubr.bf16.vlgmr.msra.gmra.mxu1 %v3571_v62 }
 0x551   :  { %3152 = vmatprep.mubr.bf16.mxu1 %v3572_v63  ;;  %3185 = vmatpush3.bf16.msra.mxu1 %v4084_v7 }
 0x552   :  { %3186 = vmatprep.subr.bf16.mxu1 %v3722_v0 }
 0x555   :  { %3187 = vmatpush3.bf16.msra.mxu1 %v4091_v9 }
 0x556   :  { %3188 = vmatprep.subr.bf16.mxu1 %v3722_v0 }
 0x558   :  { %3153 = vmatmul.mubr.bf16.gmra.mxu1 %v3573_v1 }
 0x559   :  { %3156 = vmatprep.mubr.bf16.mxu1 %v3574_v3  ;;  %3189 = vmatpush3.bf16.msra.mxu1 %v4098_v11 }
 0x55a   :  { %3190 = vmatprep.subr.bf16.mxu1 %v3722_v0 }
 0x55d   :  { %3191 = vmatpush3.bf16.msra.mxu1 %v4105_v12 }
 0x55e   :  { %3192 = vmatprep.subr.bf16.mxu1 %v3722_v0 }
 0x560   :  { %3157 = vmatmul.mubr.bf16.gmra.mxu1 %v3575_v5 }
 0x561   :  { %3193 = vmatpush3.bf16.msra.mxu1 %v4112_v14 }
 0x562   :  { %3194 = vmatprep.subr.bf16.mxu1 %v3722_v0 }
 0x565   :  { %3195 = vmatpush3.bf16.msra.mxu1 %v4119_v16 }
 0x566   :  { %3196 = vmatprep.subr.bf16.mxu1 %v3722_v0 }
 0x569   :  { %3197 = vmatpush3.bf16.msra.mxu1 %v4126_v18 }
 0x56a   :  { %3198 = vmatprep.subr.bf16.mxu1 %v3722_v0 }
 0x56d   :  { %3199 = vmatpush3.bf16.msra.mxu1 %v4133_v19 }
 0x56e   :  { %3224 = vmatprep.subr.bf16.mxu1 %v3722_v0 }
 0x5f0   :  { %v716_v21 = vpop.f32.mrf.mxu1 }
 0x5f1   :  { %v723_v22 = vadd.f32 %v716_v21, %v294_v20 }
 0x5f2   :  { %v3110_v23 = vpop.f32.mrf.mxu1 }
 0x5f3   :  { %3642 = vtanh.f32 %v723_v22 }
 0x5f4   :  { %v719_v25 = vpop.f32.mrf.mxu1 }
 0x5f5   :  { %v724_v26 = vadd.f32 %v719_v25, %v295_v24 }
 0x5f6   :  { %v3111_v27 = vpop.f32.mrf.mxu1 }
 0x5f7   :  { %3644 = vtanh.f32 %v724_v26 }
 0x600   :  { %v3643_v28 = vpop.eup %3642 }
 0x604   :  { %v3645_v29 = vpop.eup %3644 }
 0x605   :  { %v727_v31 = vpack.c.bf16 %v3645_v29, %v3643_v28 }
 0x607   :  { %2621 = vst [vmem:[#allocation2 + $0x30] sm:$0xff] %v727_v31   ;;  %3129 = vmatmul.mubr.bf16.vlgmr.msra.gmra.mxu0 %v727_v31 }
 0x608   :  { %3165 = vmatpush3.bf16.msra.mxu0 %v4084_v7  ;;  %3180 = vmatprep.mubr.msk.bf16.mxu0 %vm3723_vm0, %v3722_v0 }
 0x609   :  { %3166 = vmatprep.subr.bf16.mxu0 %v3722_v0 }
 0x60c   :  { %3167 = vmatpush3.bf16.msra.mxu0 %v4091_v9 }
 0x60d   :  { %3168 = vmatprep.subr.bf16.mxu0 %v3722_v0 }
 0x60e   :  { %v3579_v53 = vld [vmem:[#allocation2 + $0x30] sm:$0xff]  }
 0x60f   :  { %3160 = vmatprep.mubr.bf16.mxu1 %v3579_v53 }
 0x610   :  { %3169 = vmatpush3.bf16.msra.mxu0 %v4098_v11  ;;  %v3150_v44 = vpop.f32.mrf.mxu1 }
 0x611   :  { %3170 = vmatprep.subr.bf16.mxu0 %v3722_v0  ;;  %v1051_v20 = vadd.f32 %v3150_v44, %v4196_v2 }
 0x612   :  { %v980_v52 = vpop.f32.mrf.mxu1 }
 0x613   :  { %v1049_v4 = vadd.f32 %v4196_v2, %v980_v52 }
 0x614   :  { %3171 = vmatpush3.bf16.msra.mxu0 %v4105_v12  ;;  %v3151_v30 = vpop.f32.mrf.mxu1 }
 0x615   :  { %3172 = vmatprep.subr.bf16.mxu0 %v3722_v0  ;;  %v1052_v24 = vadd.f32 %v3151_v30, %v4196_v2 }
 0x616   :  { %v983_v6 = vpop.f32.mrf.mxu1 }
 0x617   :  { %v1050_v15 = vadd.f32 %v4196_v2, %v983_v6 }
 0x618   :  { %3173 = vmatpush3.bf16.msra.mxu0 %v4112_v14  ;;  %v4220_v57 = vpop.f32.mrf.mxu1 }
 0x619   :  { %3174 = vmatprep.subr.bf16.mxu0 %v3722_v0 }
 0x61a   :  { %v996_v48 = vpop.f32.mrf.mxu1 }
 0x61b   :  { %v1053_v53 = vadd.f32 %v4196_v2, %v996_v48 }
 0x61c   :  { %3175 = vmatpush3.bf16.msra.mxu0 %v4119_v16  ;;  %v4222_v50 = vpop.f32.mrf.mxu1 }
 0x61d   :  { %3176 = vmatprep.subr.bf16.mxu0 %v3722_v0 }
 0x61e   :  { %v999_v58 = vpop.f32.mrf.mxu1 }
 0x620   :  { %3177 = vmatpush3.bf16.msra.mxu0 %v4126_v18  ;;  %v4224_v59 = vpop.f32.mrf.mxu1 }
 0x621   :  { %3178 = vmatprep.subr.bf16.mxu0 %v3722_v0 }
 0x622   :  { %v4226_v60 = vpop.f32.mrf.mxu1 }
 0x624   :  { %3179 = vmatpush3.bf16.msra.mxu0 %v4133_v19  ;;  %v4228_v61 = vpop.f32.mrf.mxu1 }
 0x625   :  { %3204 = vmatprep.subr.bf16.mxu0 %v3722_v0 }
 0x626   :  { %v4230_v62 = vpop.f32.mrf.mxu1 }
 0x627   :  { %3181 = vmatmul.mubr.bf16.vlgmr.msra.gmra.mxu0 %v1065_v33 }
 0x628   :  { %3205 = vmatpush3.bf16.msra.mxu0 %v4084_v7  ;;  %3220 = vmatprep.mubr.msk.bf16.mxu0 %vm3723_vm0, %v3722_v0 }
 0x629   :  { %3206 = vmatprep.subr.bf16.mxu0 %v3722_v0 }
 0x62c   :  { %3207 = vmatpush3.bf16.msra.mxu0 %v4091_v9 }
 0x62d   :  { %3208 = vmatprep.subr.bf16.mxu0 %v3722_v0 }
 0x630   :  { %3209 = vmatpush3.bf16.msra.mxu0 %v4098_v11 }
 0x631   :  { %3210 = vmatprep.subr.bf16.mxu0 %v3722_v0 }
 0x634   :  { %3211 = vmatpush3.bf16.msra.mxu0 %v4105_v12 }
 0x635   :  { %3212 = vmatprep.subr.bf16.mxu0 %v3722_v0 }
 0x638   :  { %3213 = vmatpush3.bf16.msra.mxu0 %v4112_v14 }
 0x639   :  { %3214 = vmatprep.subr.bf16.mxu0 %v3722_v0 }
 0x63c   :  { %3215 = vmatpush3.bf16.msra.mxu0 %v4119_v16 }
 0x63d   :  { %3216 = vmatprep.subr.bf16.mxu0 %v3722_v0 }
 0x640   :  { %3217 = vmatpush3.bf16.msra.mxu0 %v4126_v18 }
 0x641   :  { %3218 = vmatprep.subr.bf16.mxu0 %v3722_v0 }
 0x644   :  { %3219 = vmatpush3.bf16.msra.mxu0 %v4133_v19 }
 0x645   :  { %3244 = vmatprep.subr.bf16.mxu0 %v3722_v0 }
 0x6c7   :  { %v772_v35 = vpop.f32.mrf.mxu0 }
 0x6c8   :  { %v779_v36 = vadd.f32 %v772_v35, %v296_v34  ;;  %v1054_v34 = vadd.f32 %v4196_v2, %v999_v58 }
 0x6c9   :  { %v3130_v37 = vpop.f32.mrf.mxu0 }
 0x6ca   :  { %3646 = vtanh.f32 %v779_v36 }
 0x6cb   :  { %v775_v39 = vpop.f32.mrf.mxu0 }
 0x6cc   :  { %v780_v40 = vadd.f32 %v775_v39, %v297_v38 }
 0x6cd   :  { %v3131_v41 = vpop.f32.mrf.mxu0 }
 0x6ce   :  { %3648 = vtanh.f32 %v780_v40  ;;  %v1055_v41 = vadd.f32 %v4220_v57, %v4196_v2 }
 0x6d7   :  { %v3647_v42 = vpop.eup %3646 }
 0x6d8   :  { %794 = vst [vmem:[%s4660_s9] sm:$0xff] %v3647_v42 }
 0x6db   :  { %v3649_v43 = vpop.eup %3648 }
 0x6dc   :  { %v2625_v45 = vpack.c.bf16 %v3649_v43, %v3647_v42  ;;  %795 = vst [vmem:[%s4660_s9 + $0x8] sm:$0xff] %v3649_v43 }
 0x6de   :  { %2626 = vst [vmem:[#allocation2 + $0x38] sm:$0xff] %v2625_v45   ;;  %v1056_v45 = vadd.f32 %v4222_v50, %v4196_v2 }
 0x6e5   :  { %v3585_v54 = vld [vmem:[#allocation2 + $0x38] sm:$0xff]  }
 0x6e6   :  { %3161 = vmatmul.mubr.bf16.gmra.mxu1 %v3585_v54 }
 0x6e7   :  { %v1148_v8 = vpop.f32.mrf.mxu0  ;;  %3200 = vmatprep.mubr.msk.bf16.mxu1 %vm3723_vm0, %v3722_v0 }
 0x6e8   :  { %v1155_v10 = vadd.f32 %v1148_v8, %v1049_v4 }
 0x6e9   :  { %v3182_v13 = vpop.f32.mrf.mxu0 }
 0x6ea   :  { %3650 = vtanh.f32 %v1155_v10  ;;  %v1057_v10 = vadd.f32 %v4196_v2, %v4226_v60 }
 0x6eb   :  { %v1151_v46 = vpop.f32.mrf.mxu0 }
 0x6ec   :  { %v1156_v17 = vadd.f32 %v1151_v46, %v1050_v15 }
 0x6ed   :  { %v3183_v47 = vpop.f32.mrf.mxu0 }
 0x6ee   :  { %3652 = vtanh.f32 %v1156_v17  ;;  %v1058_v17 = vadd.f32 %v4196_v2, %v4230_v62 }
 0x6f7   :  { %v3651_v49 = vpop.eup %3650 }
 0x6fb   :  { %v3653_v51 = vpop.eup %3652 }
 0x6fc   :  { %v1159_v56 = vpack.c.bf16 %v3653_v51, %v3651_v49 }
 0x6fe   :  { %2631 = vst [vmem:[#allocation2] sm:$0xff] %v1159_v56   ;;  %3201 = vmatmul.mubr.bf16.vlgmr.msra.gmra.mxu1 %v1159_v56 }
 0x6ff   :  { %3225 = vmatpush3.bf16.msra.mxu1 %v4084_v7  ;;  %3240 = vmatprep.mubr.msk.bf16.mxu1 %vm3723_vm0, %v3722_v0 }
 0x700   :  { %3226 = vmatprep.subr.bf16.mxu1 %v3722_v0 }
 0x703   :  { %3227 = vmatpush3.bf16.msra.mxu1 %v4091_v9 }
 0x704   :  { %3228 = vmatprep.subr.bf16.mxu1 %v3722_v0 }
 0x707   :  { %3229 = vmatpush3.bf16.msra.mxu1 %v4098_v11 }
 0x708   :  { %3230 = vmatprep.subr.bf16.mxu1 %v3722_v0 }
 0x70b   :  { %3231 = vmatpush3.bf16.msra.mxu1 %v4105_v12 }
 0x70c   :  { %3232 = vmatprep.subr.bf16.mxu1 %v3722_v0 }
 0x70f   :  { %3233 = vmatpush3.bf16.msra.mxu1 %v4112_v14 }
 0x710   :  { %3234 = vmatprep.subr.bf16.mxu1 %v3722_v0 }
 0x713   :  { %3235 = vmatpush3.bf16.msra.mxu1 %v4119_v16 }
 0x714   :  { %3236 = vmatprep.subr.bf16.mxu1 %v3722_v0 }
 0x717   :  { %3237 = vmatpush3.bf16.msra.mxu1 %v4126_v18 }
 0x718   :  { %3238 = vmatprep.subr.bf16.mxu1 %v3722_v0 }
 0x71b   :  { %3239 = vmatpush3.bf16.msra.mxu1 %v4133_v19 }
 0x71c   :  { %3264 = vmatprep.subr.bf16.mxu1 %v3722_v0 }
 0x7a6   :  { %v4232_v63 = vpop.f32.mrf.mxu1 }
 0x7a8   :  { %v4234_v1 = vpop.f32.mrf.mxu1 }
 0x7aa   :  { %v4236_v3 = vpop.f32.mrf.mxu1 }
 0x7ac   :  { %v4238_v5 = vpop.f32.mrf.mxu1 }
 0x7be   :  { %v1203_v21 = vpop.f32.mrf.mxu1 }
 0x7bf   :  { %v1210_v22 = vadd.f32 %v1203_v21, %v1051_v20  ;;  %v3588_v20 = vld [vmem:[%s4659_s3 + $0x70] sm:$0xff]   ;;  %v3587_v21 = vld [vmem:[#allocation2] sm:$0xff]  }
 0x7c0   :  { %v3202_v23 = vpop.f32.mrf.mxu1 }
 0x7c1   :  { %3654 = vtanh.f32 %v1210_v22  ;;  %v3591_v22 = vld [vmem:[%s4659_s3 + $0x58] sm:$0xff]   ;;  %v3592_v23 = vld [vmem:[%s4659_s3 + $0x50] sm:$0xff]  }
 0x7c2   :  { %v1206_v25 = vpop.f32.mrf.mxu1 }
 0x7c3   :  { %v1211_v26 = vadd.f32 %v1206_v25, %v1052_v24  ;;  %v3593_v24 = vld [vmem:[%s4659_s3 + $0x48] sm:$0xff]   ;;  %v3594_v25 = vld [vmem:[%s4659_s3 + $0x40] sm:$0xff]  }
 0x7c4   :  { %v3203_v27 = vpop.f32.mrf.mxu1 }
 0x7c5   :  { %3656 = vtanh.f32 %v1211_v26 }
 0x7ce   :  { %v3655_v28 = vpop.eup %3654 }
 0x7d2   :  { %v3657_v29 = vpop.eup %3656 }
 0x7d3   :  { %v1214_v31 = vpack.c.bf16 %v3657_v29, %v3655_v28 }
 0x7d5   :  { %2636 = vst [vmem:[#allocation2 + $0x8] sm:$0xff] %v1214_v31   ;;  %3221 = vmatmul.mubr.bf16.vlgmr.msra.gmra.mxu0 %v1214_v31 }
 0x7d6   :  { %3245 = vmatpush3.bf16.msra.mxu0 %v4084_v7  ;;  %3260 = vmatprep.mubr.msk.bf16.mxu0 %vm3723_vm0, %v3722_v0 }
 0x7d7   :  { %3246 = vmatprep.subr.bf16.mxu0 %v3722_v0 }
 0x7da   :  { %3247 = vmatpush3.bf16.msra.mxu0 %v4091_v9 }
 0x7db   :  { %3248 = vmatprep.subr.bf16.mxu0 %v3722_v0 }
 0x7dc   :  { %v3595_v26 = vld [vmem:[#allocation2 + $0x8] sm:$0xff]  }
 0x7de   :  { %3249 = vmatpush3.bf16.msra.mxu0 %v4098_v11 }
 0x7df   :  { %3250 = vmatprep.subr.bf16.mxu0 %v3722_v0 }
 0x7e2   :  { %3251 = vmatpush3.bf16.msra.mxu0 %v4105_v12 }
 0x7e3   :  { %3252 = vmatprep.subr.bf16.mxu0 %v3722_v0 }
 0x7e6   :  { %3253 = vmatpush3.bf16.msra.mxu0 %v4112_v14 }
 0x7e7   :  { %3254 = vmatprep.subr.bf16.mxu0 %v3722_v0 }
 0x7ea   :  { %3255 = vmatpush3.bf16.msra.mxu0 %v4119_v16 }
 0x7eb   :  { %3256 = vmatprep.subr.bf16.mxu0 %v3722_v0 }
 0x7ee   :  { %3257 = vmatpush3.bf16.msra.mxu0 %v4126_v18 }
 0x7ef   :  { %3258 = vmatprep.subr.bf16.mxu0 %v3722_v0 }
 0x7f2   :  { %3259 = vmatpush3.bf16.msra.mxu0 %v4133_v19 }
 0x7f3   :  { %3284 = vmatprep.subr.bf16.mxu0 %v3722_v0 }
 0x895   :  { %v1258_v55 = vpop.f32.mrf.mxu0 }
 0x896   :  { %v1265_v32 = vadd.f32 %v1258_v55, %v1053_v53  ;;  %v4355_v53 = vld [vmem:[%s4655_s4 + $0xb8] sm:$0xff]   ;;  %v4362_v55 = vld [vmem:[%s4655_s4 + $0xb0] sm:$0xff]  }
 0x897   :  { %v3222_v33 = vpop.f32.mrf.mxu0 }
 0x898   :  { %3658 = vtanh.f32 %v1265_v32  ;;  %v4369_v32 = vld [vmem:[%s4655_s4 + $0xa8] sm:$0xff]   ;;  %v4376_v33 = vld [vmem:[%s4655_s4 + $0xa0] sm:$0xff]  }
 0x899   :  { %v1261_v35 = vpop.f32.mrf.mxu0 }
 0x89a   :  { %v1266_v36 = vadd.f32 %v1261_v35, %v1054_v34  ;;  %v4383_v34 = vld [vmem:[%s4655_s4 + $0x98] sm:$0xff]   ;;  %v4390_v35 = vld [vmem:[%s4655_s4 + $0x90] sm:$0xff]  }
 0x89b   :  { %v3223_v37 = vpop.f32.mrf.mxu0 }
 0x89c   :  { %3660 = vtanh.f32 %v1266_v36  ;;  %v4397_v36 = vld [vmem:[%s4655_s4 + $0x88] sm:$0xff]   ;;  %v4404_v37 = vld [vmem:[%s4655_s4 + $0x80] sm:$0xff]  }
 0x8a5   :  { %v3659_v38 = vpop.eup %3658 }
 0x8a9   :  { %v3661_v39 = vpop.eup %3660 }
 0x8aa   :  { %v1269_v40 = vpack.c.bf16 %v3661_v39, %v3659_v38  ;;  %v1061_v38 = vadd.f32 %v4196_v2, %v4234_v1 }
 0x8ac   :  { %2641 = vst [vmem:[#allocation2 + $0x10] sm:$0xff] %v1269_v40   ;;  %3241 = vmatmul.mubr.bf16.vlgmr.msra.gmra.mxu1 %v1269_v40 }
 0x8ad   :  { %3265 = vmatpush3.bf16.msra.mxu1 %v4084_v7  ;;  %3280 = vmatprep.mubr.msk.bf16.mxu1 %vm3723_vm0, %v3722_v0 }
 0x8ae   :  { %3266 = vmatprep.subr.bf16.mxu1 %v3722_v0 }
 0x8b1   :  { %3267 = vmatpush3.bf16.msra.mxu1 %v4091_v9 }
 0x8b2   :  { %3268 = vmatprep.subr.bf16.mxu1 %v3722_v0 }
 0x8b3   :  { %v3596_v27 = vld [vmem:[#allocation2 + $0x10] sm:$0xff]  }
 0x8b5   :  { %3269 = vmatpush3.bf16.msra.mxu1 %v4098_v11 }
 0x8b6   :  { %3270 = vmatprep.subr.bf16.mxu1 %v3722_v0 }
 0x8b9   :  { %3271 = vmatpush3.bf16.msra.mxu1 %v4105_v12 }
 0x8ba   :  { %3272 = vmatprep.subr.bf16.mxu1 %v3722_v0 }
 0x8bd   :  { %3273 = vmatpush3.bf16.msra.mxu1 %v4112_v14 }
 0x8be   :  { %3274 = vmatprep.subr.bf16.mxu1 %v3722_v0 }
 0x8c1   :  { %3275 = vmatpush3.bf16.msra.mxu1 %v4119_v16 }
 0x8c2   :  { %3276 = vmatprep.subr.bf16.mxu1 %v3722_v0 }
 0x8c5   :  { %3277 = vmatpush3.bf16.msra.mxu1 %v4126_v18 }
 0x8c6   :  { %3278 = vmatprep.subr.bf16.mxu1 %v3722_v0 }
 0x8c9   :  { %3279 = vmatpush3.bf16.msra.mxu1 %v4133_v19 }
 0x8ca   :  { %3304 = vmatprep.subr.bf16.mxu1 %v3722_v0 }
 0x96c   :  { %v1313_v42 = vpop.f32.mrf.mxu1 }
 0x96d   :  { %v1320_v43 = vadd.f32 %v1313_v42, %v1055_v41  ;;  %v1062_v42 = vadd.f32 %v4196_v2, %v4238_v5  ;;  %v2500_v5 = vld [vmem:[%s4657_s1 + $0x20] sm:$0xff] }
 0x96e   :  { %v3242_v44 = vpop.f32.mrf.mxu1 }
 0x96f   :  { %3662 = vtanh.f32 %v1320_v43 }
 0x970   :  { %v1316_v52 = vpop.f32.mrf.mxu1 }
 0x971   :  { %v1321_v30 = vadd.f32 %v1316_v52, %v1056_v45 }
 0x972   :  { %v3243_v54 = vpop.f32.mrf.mxu1 }
 0x973   :  { %3664 = vtanh.f32 %v1321_v30 }
 0x97c   :  { %v3663_v4 = vpop.eup %3662 }
 0x980   :  { %v3665_v6 = vpop.eup %3664 }
 0x981   :  { %v1324_v8 = vpack.c.bf16 %v3665_v6, %v3663_v4  ;;  %v2501_v4 = vld [vmem:[%s4657_s1 + $0x28] sm:$0xff] }
 0x982   :  { %v1827_v6 = vpack.c.bf16 %v2501_v4, %v2500_v5 }
 0x983   :  { %2646 = vst [vmem:[#allocation2 + $0x18] sm:$0xff] %v1324_v8   ;;  %3261 = vmatmul.mubr.bf16.vlgmr.msra.gmra.mxu0 %v1324_v8  ;;  %v1063_v8 = vadd.f32 %v4232_v63, %v4196_v2 }
 0x984   :  { %3285 = vmatpush3.bf16.msra.mxu0 %v4084_v7  ;;  %3300 = vmatprep.mubr.msk.bf16.mxu0 %vm3723_vm0, %v3722_v0 }
 0x985   :  { %3286 = vmatprep.subr.bf16.mxu0 %v3722_v0 }
 0x988   :  { %3287 = vmatpush3.bf16.msra.mxu0 %v4091_v9 }
 0x989   :  { %3288 = vmatprep.subr.bf16.mxu0 %v3722_v0 }
 0x98a   :  { %v3597_v28 = vld [vmem:[#allocation2 + $0x18] sm:$0xff]  }
 0x98c   :  { %3289 = vmatpush3.bf16.msra.mxu0 %v4098_v11 }
 0x98d   :  { %3290 = vmatprep.subr.bf16.mxu0 %v3722_v0 }
 0x990   :  { %3291 = vmatpush3.bf16.msra.mxu0 %v4105_v12 }
 0x991   :  { %3292 = vmatprep.subr.bf16.mxu0 %v3722_v0 }
 0x994   :  { %3293 = vmatpush3.bf16.msra.mxu0 %v4112_v14 }
 0x995   :  { %3294 = vmatprep.subr.bf16.mxu0 %v3722_v0 }
 0x998   :  { %3295 = vmatpush3.bf16.msra.mxu0 %v4119_v16 }
 0x999   :  { %3296 = vmatprep.subr.bf16.mxu0 %v3722_v0 }
 0x99c   :  { %3297 = vmatpush3.bf16.msra.mxu0 %v4126_v18 }
 0x99d   :  { %3298 = vmatprep.subr.bf16.mxu0 %v3722_v0 }
 0x9a0   :  { %3299 = vmatpush3.bf16.msra.mxu0 %v4133_v19 }
 0xa43   :  { %v1368_v13 = vpop.f32.mrf.mxu0 }
 0xa44   :  { %v1375_v15 = vadd.f32 %v1368_v13, %v1057_v10 }
 0xa45   :  { %v3262_v46 = vpop.f32.mrf.mxu0 }
 0xa46   :  { %3666 = vtanh.f32 %v1375_v15  ;;  %v1064_v46 = vadd.f32 %v4236_v3, %v4196_v2 }
 0xa47   :  { %v1371_v47 = vpop.f32.mrf.mxu0 }
 0xa48   :  { %v1376_v49 = vadd.f32 %v1371_v47, %v1058_v17 }
 0xa49   :  { %v3263_v51 = vpop.f32.mrf.mxu0 }
 0xa4a   :  { %3668 = vtanh.f32 %v1376_v49 }
 0xa53   :  { %v3667_v56 = vpop.eup %3666 }
 0xa57   :  { %v3669_v57 = vpop.eup %3668 }
 0xa58   :  { %v1379_v48 = vpack.c.bf16 %v3669_v57, %v3667_v56 }
 0xa5a   :  { %2651 = vst [vmem:[#allocation2 + $0x20] sm:$0xff] %v1379_v48   ;;  %3281 = vmatmul.mubr.bf16.vlgmr.msra.gmra.mxu1 %v1379_v48 }
 0xa5b   :  { %3305 = vmatpush3.bf16.msra.mxu1 %v4084_v7  ;;  %3320 = vmatprep.mubr.msk.bf16.mxu1 %vm3723_vm0, %v3722_v0  ;;  %v3586_v7 = vld [vmem:[%s4659_s3 + $0x78] sm:$0xff]  }
 0xa5c   :  { %3306 = vmatprep.subr.bf16.mxu1 %v3722_v0  ;;  %3324 = vmatprep.subr.bf16.mxu0 %v3586_v7 }
 0xa5f   :  { %3307 = vmatpush3.bf16.msra.mxu1 %v4091_v9  ;;  %v1059_v9 = vadd.f32 %v4224_v59, %v4196_v2  ;;  %v3589_v59 = vld [vmem:[%s4659_s3 + $0x68] sm:$0xff]  }
 0xa60   :  { %3308 = vmatprep.subr.bf16.mxu1 %v3722_v0 }
 0xa61   :  { %v3598_v29 = vld [vmem:[#allocation2 + $0x20] sm:$0xff]  }
 0xa63   :  { %3309 = vmatpush3.bf16.msra.mxu1 %v4098_v11 }
 0xa64   :  { %3310 = vmatprep.subr.bf16.mxu1 %v3722_v0 }
 0xa67   :  { %3311 = vmatpush3.bf16.msra.mxu1 %v4105_v12 }
 0xa68   :  { %3312 = vmatprep.subr.bf16.mxu1 %v3722_v0 }
 0xa6b   :  { %3313 = vmatpush3.bf16.msra.mxu1 %v4112_v14 }
 0xa6c   :  { %3314 = vmatprep.subr.bf16.mxu1 %v3722_v0 }
 0xa6f   :  { %3315 = vmatpush3.bf16.msra.mxu1 %v4119_v16  ;;  %v1060_v16 = vadd.f32 %v4228_v61, %v4196_v2  ;;  %v3590_v61 = vld [vmem:[%s4659_s3 + $0x60] sm:$0xff]  }
 0xa70   :  { %3316 = vmatprep.subr.bf16.mxu1 %v3722_v0 }
 0xa73   :  { %3317 = vmatpush3.bf16.msra.mxu1 %v4126_v18 }
 0xa74   :  { %3318 = vmatprep.subr.bf16.mxu1 %v3722_v0 }
 0xa77   :  { %3319 = vmatpush3.bf16.msra.mxu1 %v4133_v19 }
 0xa78   :  { %3356 = vmatprep.subr.bf16.mxu1 %v3722_v0 }
 0xb1a   :  { %v1423_v11 = vpop.f32.mrf.mxu1 }
 0xb1b   :  { %v1430_v12 = vadd.f32 %v1423_v11, %v1059_v9 }
 0xb1c   :  { %v3282_v14 = vpop.f32.mrf.mxu1 }
 0xb1d   :  { %3670 = vtanh.f32 %v1430_v12 }
 0xb1e   :  { %v1426_v18 = vpop.f32.mrf.mxu1 }
 0xb1f   :  { %v1431_v50 = vadd.f32 %v1426_v18, %v1060_v16 }
 0xb20   :  { %v3283_v19 = vpop.f32.mrf.mxu1 }
 0xb21   :  { %3672 = vtanh.f32 %v1431_v50 }
 0xb2a   :  { %v3671_v58 = vpop.eup %3670 }
 0xb2e   :  { %v3673_v60 = vpop.eup %3672 }
 0xb2f   :  { %v1434_v62 = vpack.c.bf16 %v3673_v60, %v3671_v58 }
 0xb31   :  { %2656 = vst [vmem:[#allocation2 + $0x28] sm:$0xff] %v1434_v62   ;;  %3301 = vmatmul.mubr.bf16.vlgmr.msra.gmra.mxu0 %v1434_v62 }
 0xb32   :  { %3325 = vmatpush3.bf16.msra.mxu0 %v3586_v7  ;;  %3340 = vmatprep.mubr.bf16.mxu0 %v3587_v21  ;;  %v4467_v7 = vld [vmem:[%s4658_s5 + $0x2] ss:$0 sm:$0xff] }
 0xb33   :  { %3326 = vmatprep.subr.bf16.mxu0 %v3588_v20 }
 0xb36   :  { %3327 = vmatpush3.bf16.msra.mxu0 %v3588_v20 }
 0xb37   :  { %3328 = vmatprep.subr.bf16.mxu0 %v3589_v59 }
 0xb38   :  { %v3599_v31 = vld [vmem:[#allocation2 + $0x28] sm:$0xff]  }
 0xb3a   :  { %3329 = vmatpush3.bf16.msra.mxu0 %v3589_v59 }
 0xb3b   :  { %3330 = vmatprep.subr.bf16.mxu0 %v3590_v61 }
 0xb3e   :  { %3331 = vmatpush3.bf16.msra.mxu0 %v3590_v61 }
 0xb3f   :  { %3332 = vmatprep.subr.bf16.mxu0 %v3591_v22 }
 0xb42   :  { %3333 = vmatpush3.bf16.msra.mxu0 %v3591_v22 }
 0xb43   :  { %3334 = vmatprep.subr.bf16.mxu0 %v3592_v23 }
 0xb46   :  { %3335 = vmatpush3.bf16.msra.mxu0 %v3592_v23 }
 0xb47   :  { %3336 = vmatprep.subr.bf16.mxu0 %v3593_v24 }
 0xb4a   :  { %3337 = vmatpush3.bf16.msra.mxu0 %v3593_v24 }
 0xb4b   :  { %3338 = vmatprep.subr.bf16.mxu0 %v3594_v25 }
 0xb4e   :  { %3339 = vmatpush3.bf16.msra.mxu0 %v3594_v25 }
 0xb4f   :  { %3376 = vmatprep.subr.bf16.mxu0 %v3722_v0 }
 0xb51   :  { %3341 = vmatmul.mubr.bf16.vlgmr.msra.gmra.mxu0 %v3595_v26 }
 0xb52   :  { %3344 = vmatprep.mubr.bf16.mxu0 %v3596_v27  ;;  %3377 = vmatpush3.bf16.msra.mxu0 %v4355_v53 }
 0xb53   :  { %3378 = vmatprep.subr.bf16.mxu0 %v3722_v0 }
 0xb56   :  { %3379 = vmatpush3.bf16.msra.mxu0 %v4362_v55 }
 0xb57   :  { %3380 = vmatprep.subr.bf16.mxu0 %v3722_v0 }
 0xb59   :  { %3345 = vmatmul.mubr.bf16.gmra.mxu0 %v3597_v28 }
 0xb5a   :  { %3348 = vmatprep.mubr.bf16.mxu0 %v3598_v29  ;;  %3381 = vmatpush3.bf16.msra.mxu0 %v4369_v32 }
 0xb5b   :  { %3382 = vmatprep.subr.bf16.mxu0 %v3722_v0 }
 0xb5e   :  { %3383 = vmatpush3.bf16.msra.mxu0 %v4376_v33 }
 0xb5f   :  { %3384 = vmatprep.subr.bf16.mxu0 %v3722_v0 }
 0xb61   :  { %3349 = vmatmul.mubr.bf16.gmra.mxu0 %v3599_v31 }
 0xb62   :  { %3385 = vmatpush3.bf16.msra.mxu0 %v4383_v34 }
 0xb63   :  { %3386 = vmatprep.subr.bf16.mxu0 %v3722_v0 }
 0xb66   :  { %3387 = vmatpush3.bf16.msra.mxu0 %v4390_v35 }
 0xb67   :  { %3388 = vmatprep.subr.bf16.mxu0 %v3722_v0 }
 0xb6a   :  { %3389 = vmatpush3.bf16.msra.mxu0 %v4397_v36 }
 0xb6b   :  { %3390 = vmatprep.subr.bf16.mxu0 %v3722_v0 }
 0xb6e   :  { %3391 = vmatpush3.bf16.msra.mxu0 %v4404_v37 }
 0xb6f   :  { %3416 = vmatprep.subr.bf16.mxu0 %v3722_v0 }
 0xbf1   :  { %v1478_v39 = vpop.f32.mrf.mxu0 }
 0xbf2   :  { %v1485_v40 = vadd.f32 %v1478_v39, %v1061_v38 }
 0xbf3   :  { %v3302_v41 = vpop.f32.mrf.mxu0 }
 0xbf4   :  { %3674 = vtanh.f32 %v1485_v40 }
 0xbf5   :  { %v1481_v43 = vpop.f32.mrf.mxu0 }
 0xbf6   :  { %v1486_v44 = vadd.f32 %v1481_v43, %v1062_v42 }
 0xbf7   :  { %v3303_v45 = vpop.f32.mrf.mxu0 }
 0xbf8   :  { %3676 = vtanh.f32 %v1486_v44 }
 0xc01   :  { %v3675_v52 = vpop.eup %3674 }
 0xc05   :  { %v3677_v30 = vpop.eup %3676 }
 0xc06   :  { %v1489_v54 = vpack.c.bf16 %v3677_v30, %v3675_v52 }
 0xc08   :  { %2661 = vst [vmem:[#allocation2 + $0x30] sm:$0xff] %v1489_v54   ;;  %3321 = vmatmul.mubr.bf16.vlgmr.msra.gmra.mxu1 %v1489_v54 }
 0xc09   :  { %3357 = vmatpush3.bf16.msra.mxu1 %v4355_v53  ;;  %3372 = vmatprep.mubr.msk.bf16.mxu1 %vm3723_vm0, %v3722_v0 }
 0xc0a   :  { %3358 = vmatprep.subr.bf16.mxu1 %v3722_v0 }
 0xc0d   :  { %3359 = vmatpush3.bf16.msra.mxu1 %v4362_v55 }
 0xc0e   :  { %3360 = vmatprep.subr.bf16.mxu1 %v3722_v0 }
 0xc0f   :  { %v3603_v1 = vld [vmem:[#allocation2 + $0x30] sm:$0xff]  }
 0xc10   :  { %3352 = vmatprep.mubr.bf16.mxu0 %v3603_v1 }
 0xc11   :  { %3361 = vmatpush3.bf16.msra.mxu1 %v4369_v32  ;;  %v3342_v57 = vpop.f32.mrf.mxu0 }
 0xc12   :  { %3362 = vmatprep.subr.bf16.mxu1 %v3722_v0  ;;  %v1813_v38 = vadd.f32 %v3342_v57, %v4467_v7 }
 0xc13   :  { %v1742_v63 = vpop.f32.mrf.mxu0 }
 0xc14   :  { %v1811_v9 = vadd.f32 %v4467_v7, %v1742_v63 }
 0xc15   :  { %3363 = vmatpush3.bf16.msra.mxu1 %v4376_v33  ;;  %v3343_v2 = vpop.f32.mrf.mxu0 }
 0xc16   :  { %3364 = vmatprep.subr.bf16.mxu1 %v3722_v0  ;;  %v1814_v42 = vadd.f32 %v3343_v2, %v4467_v7 }
 0xc17   :  { %v1745_v11 = vpop.f32.mrf.mxu0 }
 0xc18   :  { %v1812_v18 = vadd.f32 %v4467_v7, %v1745_v11 }
 0xc19   :  { %3365 = vmatpush3.bf16.msra.mxu1 %v4383_v34  ;;  %v4491_v21 = vpop.f32.mrf.mxu0 }
 0xc1a   :  { %3366 = vmatprep.subr.bf16.mxu1 %v3722_v0 }
 0xc1b   :  { %v1758_v59 = vpop.f32.mrf.mxu0 }
 0xc1c   :  { %v1815_v1 = vadd.f32 %v4467_v7, %v1758_v59 }
 0xc1d   :  { %3367 = vmatpush3.bf16.msra.mxu1 %v4390_v35  ;;  %v4493_v61 = vpop.f32.mrf.mxu0 }
 0xc1e   :  { %3368 = vmatprep.subr.bf16.mxu1 %v3722_v0 }
 0xc1f   :  { %v1761_v22 = vpop.f32.mrf.mxu0 }
 0xc21   :  { %3369 = vmatpush3.bf16.msra.mxu1 %v4397_v36  ;;  %v4495_v23 = vpop.f32.mrf.mxu0 }
 0xc22   :  { %3370 = vmatprep.subr.bf16.mxu1 %v3722_v0 }
 0xc23   :  { %v4497_v24 = vpop.f32.mrf.mxu0 }
 0xc25   :  { %3371 = vmatpush3.bf16.msra.mxu1 %v4404_v37  ;;  %v4499_v25 = vpop.f32.mrf.mxu0 }
 0xc26   :  { %3396 = vmatprep.subr.bf16.mxu1 %v3722_v0 }
 0xc27   :  { %v4501_v26 = vpop.f32.mrf.mxu0 }
 0xc28   :  { %3373 = vmatmul.mubr.bf16.vlgmr.msra.gmra.mxu1 %v1827_v6 }
 0xc29   :  { %3397 = vmatpush3.bf16.msra.mxu1 %v4355_v53  ;;  %3412 = vmatprep.mubr.msk.bf16.mxu1 %vm3723_vm0, %v3722_v0 }
 0xc2a   :  { %3398 = vmatprep.subr.bf16.mxu1 %v3722_v0 }
 0xc2d   :  { %3399 = vmatpush3.bf16.msra.mxu1 %v4362_v55 }
 0xc2e   :  { %3400 = vmatprep.subr.bf16.mxu1 %v3722_v0 }
 0xc31   :  { %3401 = vmatpush3.bf16.msra.mxu1 %v4369_v32 }
 0xc32   :  { %3402 = vmatprep.subr.bf16.mxu1 %v3722_v0 }
 0xc35   :  { %3403 = vmatpush3.bf16.msra.mxu1 %v4376_v33 }
 0xc36   :  { %3404 = vmatprep.subr.bf16.mxu1 %v3722_v0 }
 0xc39   :  { %3405 = vmatpush3.bf16.msra.mxu1 %v4383_v34 }
 0xc3a   :  { %3406 = vmatprep.subr.bf16.mxu1 %v3722_v0 }
 0xc3d   :  { %3407 = vmatpush3.bf16.msra.mxu1 %v4390_v35 }
 0xc3e   :  { %3408 = vmatprep.subr.bf16.mxu1 %v3722_v0 }
 0xc41   :  { %3409 = vmatpush3.bf16.msra.mxu1 %v4397_v36 }
 0xc42   :  { %3410 = vmatprep.subr.bf16.mxu1 %v3722_v0 }
 0xc45   :  { %3411 = vmatpush3.bf16.msra.mxu1 %v4404_v37 }
 0xc46   :  { %3436 = vmatprep.subr.bf16.mxu1 %v3722_v0 }
 0xcc8   :  { %v1533_v10 = vpop.f32.mrf.mxu1 }
 0xcc9   :  { %v1540_v13 = vadd.f32 %v1533_v10, %v1063_v8  ;;  %v1816_v8 = vadd.f32 %v4467_v7, %v1761_v22 }
 0xcca   :  { %v3322_v15 = vpop.f32.mrf.mxu1 }
 0xccb   :  { %3678 = vtanh.f32 %v1540_v13 }
 0xccc   :  { %v1536_v17 = vpop.f32.mrf.mxu1 }
 0xccd   :  { %v1541_v47 = vadd.f32 %v1536_v17, %v1064_v46 }
 0xcce   :  { %v3323_v49 = vpop.f32.mrf.mxu1 }
 0xccf   :  { %3680 = vtanh.f32 %v1541_v47  ;;  %v1817_v49 = vadd.f32 %v4491_v21, %v4467_v7 }
 0xcd8   :  { %v3679_v51 = vpop.eup %3678 }
 0xcd9   :  { %2482 = vst [vmem:[%s4660_s9 + $0x10] sm:$0xff] %v3679_v51 }
 0xcdc   :  { %v3681_v56 = vpop.eup %3680 }
 0xcdd   :  { %v2665_v48 = vpack.c.bf16 %v3681_v56, %v3679_v51  ;;  %2483 = vst [vmem:[%s4660_s9 + $0x18] sm:$0xff] %v3681_v56 }
 0xcdf   :  { %2666 = vst [vmem:[#allocation2 + $0x38] sm:$0xff] %v2665_v48   ;;  %v1818_v48 = vadd.f32 %v4493_v61, %v4467_v7 }
 0xce6   :  { %v3609_v3 = vld [vmem:[#allocation2 + $0x38] sm:$0xff]  }
 0xce7   :  { %3353 = vmatmul.mubr.bf16.gmra.mxu0 %v3609_v3 }
 0xce8   :  { %v1910_v12 = vpop.f32.mrf.mxu1  ;;  %3392 = vmatprep.mubr.msk.bf16.mxu0 %vm3723_vm0, %v3722_v0 }
 0xce9   :  { %v1917_v14 = vadd.f32 %v1910_v12, %v1811_v9 }
 0xcea   :  { %v3374_v16 = vpop.f32.mrf.mxu1 }
 0xceb   :  { %3682 = vtanh.f32 %v1917_v14  ;;  %v1819_v14 = vadd.f32 %v4467_v7, %v4497_v24 }
 0xcec   :  { %v1913_v50 = vpop.f32.mrf.mxu1 }
 0xced   :  { %v1918_v19 = vadd.f32 %v1913_v50, %v1812_v18 }
 0xcee   :  { %v3375_v58 = vpop.f32.mrf.mxu1 }
 0xcef   :  { %3684 = vtanh.f32 %v1918_v19  ;;  %v1820_v19 = vadd.f32 %v4467_v7, %v4501_v26 }
 0xcf8   :  { %v3683_v60 = vpop.eup %3682 }
 0xcfc   :  { %v3685_v62 = vpop.eup %3684 }
 0xcfd   :  { %v1921_v20 = vpack.c.bf16 %v3685_v62, %v3683_v60 }
 0xcff   :  { %3393 = vmatmul.mubr.bf16.vlgmr.msra.gmra.mxu0 %v1921_v20 }
 0xd00   :  { %3417 = vmatpush3.bf16.msra.mxu0 %v4355_v53  ;;  %3432 = vmatprep.mubr.msk.bf16.mxu0 %vm3723_vm0, %v3722_v0 }
 0xd01   :  { %3418 = vmatprep.subr.bf16.mxu0 %v3722_v0 }
 0xd04   :  { %3419 = vmatpush3.bf16.msra.mxu0 %v4362_v55 }
 0xd05   :  { %3420 = vmatprep.subr.bf16.mxu0 %v3722_v0 }
 0xd08   :  { %3421 = vmatpush3.bf16.msra.mxu0 %v4369_v32 }
 0xd09   :  { %3422 = vmatprep.subr.bf16.mxu0 %v3722_v0 }
 0xd0c   :  { %3423 = vmatpush3.bf16.msra.mxu0 %v4376_v33 }
 0xd0d   :  { %3424 = vmatprep.subr.bf16.mxu0 %v3722_v0 }
 0xd10   :  { %3425 = vmatpush3.bf16.msra.mxu0 %v4383_v34 }
 0xd11   :  { %3426 = vmatprep.subr.bf16.mxu0 %v3722_v0 }
 0xd14   :  { %3427 = vmatpush3.bf16.msra.mxu0 %v4390_v35 }
 0xd15   :  { %3428 = vmatprep.subr.bf16.mxu0 %v3722_v0 }
 0xd18   :  { %3429 = vmatpush3.bf16.msra.mxu0 %v4397_v36 }
 0xd19   :  { %3430 = vmatprep.subr.bf16.mxu0 %v3722_v0 }
 0xd1c   :  { %3431 = vmatpush3.bf16.msra.mxu0 %v4404_v37 }
 0xd1d   :  { %3456 = vmatprep.subr.bf16.mxu0 %v3722_v0 }
 0xda7   :  { %v4503_v27 = vpop.f32.mrf.mxu0 }
 0xda9   :  { %v4505_v28 = vpop.f32.mrf.mxu0 }
 0xdab   :  { %v4507_v29 = vpop.f32.mrf.mxu0 }
 0xdad   :  { %v4509_v31 = vpop.f32.mrf.mxu0 }
 0xdbf   :  { %v1956_v39 = vpop.f32.mrf.mxu0 }
 0xdc0   :  { %v1963_v40 = vadd.f32 %v1956_v39, %v1813_v38 }
 0xdc1   :  { %v3394_v41 = vpop.f32.mrf.mxu0 }
 0xdc2   :  { %3686 = vtanh.f32 %v1963_v40  ;;  %v1824_v41 = vadd.f32 %v4467_v7, %v4509_v31  ;;  %v3614_v31 = vld [vmem:[%s4661_s6 + $0x18] sm:$0xff]  }
 0xdc3   :  { %v1959_v43 = vpop.f32.mrf.mxu0 }
 0xdc4   :  { %v1964_v44 = vadd.f32 %v1959_v43, %v1814_v42 }
 0xdc5   :  { %v3395_v45 = vpop.f32.mrf.mxu0 }
 0xdc6   :  { %3688 = vtanh.f32 %v1964_v44 }
 0xdcf   :  { %v3687_v52 = vpop.eup %3686 }
 0xdd3   :  { %v3689_v30 = vpop.eup %3688 }
 0xdd4   :  { %v1967_v54 = vpack.c.bf16 %v3689_v30, %v3687_v52 }
 0xdd6   :  { %3413 = vmatmul.mubr.bf16.vlgmr.msra.gmra.mxu1 %v1967_v54  ;;  %v3612_v54 = vld [vmem:[%s4661_s6 + $0x28] sm:$0xff]  }
 0xdd7   :  { %3437 = vmatpush3.bf16.msra.mxu1 %v4355_v53  ;;  %3452 = vmatprep.mubr.msk.bf16.mxu1 %vm3723_vm0, %v3722_v0 }
 0xdd8   :  { %3438 = vmatprep.subr.bf16.mxu1 %v3722_v0 }
 0xddb   :  { %3439 = vmatpush3.bf16.msra.mxu1 %v4362_v55 }
 0xddc   :  { %3440 = vmatprep.subr.bf16.mxu1 %v3722_v0 }
 0xddf   :  { %3441 = vmatpush3.bf16.msra.mxu1 %v4369_v32 }
 0xde0   :  { %3442 = vmatprep.subr.bf16.mxu1 %v3722_v0 }
 0xde3   :  { %3443 = vmatpush3.bf16.msra.mxu1 %v4376_v33 }
 0xde4   :  { %3444 = vmatprep.subr.bf16.mxu1 %v3722_v0 }
 0xde7   :  { %3445 = vmatpush3.bf16.msra.mxu1 %v4383_v34 }
 0xde8   :  { %3446 = vmatprep.subr.bf16.mxu1 %v3722_v0 }
 0xdeb   :  { %3447 = vmatpush3.bf16.msra.mxu1 %v4390_v35 }
 0xdec   :  { %3448 = vmatprep.subr.bf16.mxu1 %v3722_v0 }
 0xdef   :  { %3449 = vmatpush3.bf16.msra.mxu1 %v4397_v36 }
 0xdf0   :  { %3450 = vmatprep.subr.bf16.mxu1 %v3722_v0 }
 0xdf3   :  { %3451 = vmatpush3.bf16.msra.mxu1 %v4404_v37 }
 0xdf4   :  { %3476 = vmatprep.subr.bf16.mxu1 %v3722_v0 }
 0xe96   :  { %v2002_v5 = vpop.f32.mrf.mxu1 }
 0xe97   :  { %v2009_v4 = vadd.f32 %v2002_v5, %v1815_v1  ;;  %v3615_v1 = vld [vmem:[%s4661_s6 + $0x10] sm:$0xff]   ;;  %v3616_v5 = vld [vmem:[%s4661_s6 + $0x8] sm:$0xff]  }
 0xe98   :  { %v3414_v6 = vpop.f32.mrf.mxu1 }
 0xe99   :  { %3690 = vtanh.f32 %v2009_v4  ;;  %v3617_v4 = vld [vmem:[%s4661_s6] sm:$0xff]   ;;  %v1825_v6 = vadd.f32 %v4503_v27, %v4467_v7 }
 0xe9a   :  { %v2005_v10 = vpop.f32.mrf.mxu1 }
 0xe9b   :  { %v2010_v13 = vadd.f32 %v2005_v10, %v1816_v8 }
 0xe9c   :  { %v3415_v15 = vpop.f32.mrf.mxu1 }
 0xe9d   :  { %3692 = vtanh.f32 %v2010_v13  ;;  %v1826_v15 = vadd.f32 %v4507_v29, %v4467_v7 }
 0xea6   :  { %v3691_v46 = vpop.eup %3690 }
 0xeaa   :  { %v3693_v17 = vpop.eup %3692 }
 0xeab   :  { %v2013_v47 = vpack.c.bf16 %v3693_v17, %v3691_v46 }
 0xead   :  { %3433 = vmatmul.mubr.bf16.vlgmr.msra.gmra.mxu0 %v2013_v47 }
 0xeae   :  { %3457 = vmatpush3.bf16.msra.mxu0 %v4355_v53  ;;  %3472 = vmatprep.mubr.msk.bf16.mxu0 %vm3723_vm0, %v3722_v0 }
 0xeaf   :  { %3458 = vmatprep.subr.bf16.mxu0 %v3722_v0 }
 0xeb2   :  { %3459 = vmatpush3.bf16.msra.mxu0 %v4362_v55 }
 0xeb3   :  { %3460 = vmatprep.subr.bf16.mxu0 %v3722_v0 }
 0xeb6   :  { %3461 = vmatpush3.bf16.msra.mxu0 %v4369_v32 }
 0xeb7   :  { %3462 = vmatprep.subr.bf16.mxu0 %v3722_v0 }
 0xeba   :  { %3463 = vmatpush3.bf16.msra.mxu0 %v4376_v33 }
 0xebb   :  { %3464 = vmatprep.subr.bf16.mxu0 %v3722_v0 }
 0xebe   :  { %3465 = vmatpush3.bf16.msra.mxu0 %v4383_v34 }
 0xebf   :  { %3466 = vmatprep.subr.bf16.mxu0 %v3722_v0 }
 0xec2   :  { %3467 = vmatpush3.bf16.msra.mxu0 %v4390_v35 }
 0xec3   :  { %3468 = vmatprep.subr.bf16.mxu0 %v3722_v0 }
 0xec6   :  { %3469 = vmatpush3.bf16.msra.mxu0 %v4397_v36 }
 0xec7   :  { %3470 = vmatprep.subr.bf16.mxu0 %v3722_v0 }
 0xeca   :  { %3471 = vmatpush3.bf16.msra.mxu0 %v4404_v37 }
 0xecb   :  { %3496 = vmatprep.subr.bf16.mxu0 %v3722_v0 }
 0xf6d   :  { %v2048_v51 = vpop.f32.mrf.mxu0 }
 0xf6e   :  { %v2055_v56 = vadd.f32 %v2048_v51, %v1817_v49 }
 0xf6f   :  { %v3434_v57 = vpop.f32.mrf.mxu0 }
 0xf70   :  { %3694 = vtanh.f32 %v2055_v56 }
 0xf71   :  { %v2051_v63 = vpop.f32.mrf.mxu0 }
 0xf72   :  { %v2056_v2 = vadd.f32 %v2051_v63, %v1818_v48 }
 0xf73   :  { %v3435_v3 = vpop.f32.mrf.mxu0 }
 0xf74   :  { %3696 = vtanh.f32 %v2056_v2 }
 0xf7d   :  { %v3695_v9 = vpop.eup %3694 }
 0xf81   :  { %v3697_v11 = vpop.eup %3696 }
 0xf82   :  { %v2059_v12 = vpack.c.bf16 %v3697_v11, %v3695_v9 }
 0xf84   :  { %3453 = vmatmul.mubr.bf16.vlgmr.msra.gmra.mxu1 %v2059_v12 }
 0xf85   :  { %3477 = vmatpush3.bf16.msra.mxu1 %v4355_v53  ;;  %3492 = vmatprep.mubr.msk.bf16.mxu1 %vm3723_vm0, %v3722_v0 }
 0xf86   :  { %3478 = vmatprep.subr.bf16.mxu1 %v3722_v0 }
 0xf89   :  { %3479 = vmatpush3.bf16.msra.mxu1 %v4362_v55 }
 0xf8a   :  { %3480 = vmatprep.subr.bf16.mxu1 %v3722_v0 }
 0xf8d   :  { %3481 = vmatpush3.bf16.msra.mxu1 %v4369_v32 }
 0xf8e   :  { %3482 = vmatprep.subr.bf16.mxu1 %v3722_v0 }
 0xf91   :  { %3483 = vmatpush3.bf16.msra.mxu1 %v4376_v33 }
 0xf92   :  { %3484 = vmatprep.subr.bf16.mxu1 %v3722_v0 }
 0xf95   :  { %3485 = vmatpush3.bf16.msra.mxu1 %v4383_v34 }
 0xf96   :  { %3486 = vmatprep.subr.bf16.mxu1 %v3722_v0 }
 0xf99   :  { %3487 = vmatpush3.bf16.msra.mxu1 %v4390_v35 }
 0xf9a   :  { %3488 = vmatprep.subr.bf16.mxu1 %v3722_v0 }
 0xf9d   :  { %3489 = vmatpush3.bf16.msra.mxu1 %v4397_v36 }
 0xf9e   :  { %3490 = vmatprep.subr.bf16.mxu1 %v3722_v0 }
 0xfa1   :  { %3491 = vmatpush3.bf16.msra.mxu1 %v4404_v37 }
 0xfa2   :  { %3516 = vmatprep.subr.bf16.mxu1 %v3722_v0 }
0x1044   :  { %v2094_v16 = vpop.f32.mrf.mxu1 }
0x1045   :  { %v2101_v18 = vadd.f32 %v2094_v16, %v1819_v14 }
0x1046   :  { %v3454_v50 = vpop.f32.mrf.mxu1 }
0x1047   :  { %3698 = vtanh.f32 %v2101_v18 }
0x1048   :  { %v2097_v58 = vpop.f32.mrf.mxu1 }
0x1049   :  { %v2102_v60 = vadd.f32 %v2097_v58, %v1820_v19 }
0x104a   :  { %v3455_v62 = vpop.f32.mrf.mxu1 }
0x104b   :  { %3700 = vtanh.f32 %v2102_v60 }
0x1054   :  { %v3699_v20 = vpop.eup %3698 }
0x1058   :  { %v3701_v21 = vpop.eup %3700 }
0x1059   :  { %v2105_v59 = vpack.c.bf16 %v3701_v21, %v3699_v20 }
0x105b   :  { %3473 = vmatmul.mubr.bf16.vlgmr.msra.gmra.mxu0 %v2105_v59 }
0x105c   :  { %3497 = vmatpush3.bf16.msra.mxu0 %v4355_v53  ;;  %3512 = vmatprep.mubr.msk.bf16.mxu0 %vm3723_vm0, %v3722_v0  ;;  %v1821_v53 = vadd.f32 %v4495_v23, %v4467_v7  ;;  %v3611_v23 = vld [vmem:[%s4661_s6 + $0x30] sm:$0xff]  }
0x105d   :  { %3498 = vmatprep.subr.bf16.mxu0 %v3722_v0 }
0x1060   :  { %3499 = vmatpush3.bf16.msra.mxu0 %v4362_v55 }
0x1061   :  { %3500 = vmatprep.subr.bf16.mxu0 %v3722_v0 }
0x1064   :  { %3501 = vmatpush3.bf16.msra.mxu0 %v4369_v32 }
0x1065   :  { %3502 = vmatprep.subr.bf16.mxu0 %v3722_v0 }
0x1068   :  { %3503 = vmatpush3.bf16.msra.mxu0 %v4376_v33 }
0x1069   :  { %3504 = vmatprep.subr.bf16.mxu0 %v3722_v0 }
0x106c   :  { %3505 = vmatpush3.bf16.msra.mxu0 %v4383_v34  ;;  %v1822_v34 = vadd.f32 %v4499_v25, %v4467_v7  ;;  %v1823_v25 = vadd.f32 %v4467_v7, %v4505_v28  ;;  %v3613_v28 = vld [vmem:[%s4661_s6 + $0x20] sm:$0xff]  }
0x106d   :  { %3506 = vmatprep.subr.bf16.mxu0 %v3722_v0  ;;  %v2546_v7 = vld [vmem:[%s4662_s7] ss:$0 sm:$0xff] }
0x1070   :  { %3507 = vmatpush3.bf16.msra.mxu0 %v4390_v35 }
0x1071   :  { %3508 = vmatprep.subr.bf16.mxu0 %v3722_v0 }
0x1074   :  { %3509 = vmatpush3.bf16.msra.mxu0 %v4397_v36 }
0x1075   :  { %3510 = vmatprep.subr.bf16.mxu0 %v3722_v0 }
0x1078   :  { %3511 = vmatpush3.bf16.msra.mxu0 %v4404_v37  ;;  %v3610_v37 = vld [vmem:[%s4661_s6 + $0x38] sm:$0xff]  }
0x111b   :  { %v2140_v55 = vpop.f32.mrf.mxu0 }
0x111c   :  { %v2147_v32 = vadd.f32 %v2140_v55, %v1821_v53 }
0x111d   :  { %v3474_v33 = vpop.f32.mrf.mxu0 }
0x111e   :  { %3702 = vtanh.f32 %v2147_v32 }
0x111f   :  { %v2143_v61 = vpop.f32.mrf.mxu0 }
0x1120   :  { %v2148_v22 = vadd.f32 %v2143_v61, %v1822_v34 }
0x1121   :  { %v3475_v35 = vpop.f32.mrf.mxu0 }
0x1122   :  { %3704 = vtanh.f32 %v2148_v22 }
0x112b   :  { %v3703_v24 = vpop.eup %3702 }
0x112f   :  { %v3705_v36 = vpop.eup %3704 }
0x1130   :  { %v2151_v26 = vpack.c.bf16 %v3705_v36, %v3703_v24 }
0x1132   :  { %3493 = vmatmul.mubr.bf16.vlgmr.msra.gmra.mxu1 %v2151_v26 }
0x1133   :  { %3532 = vmatprep.mubr.msk.bf16.mxu1 %vm3723_vm0, %v3722_v0  ;;  %3517 = vmatpush3.bf16.msra.mxu1 %v3610_v37 }
0x1134   :  { %3518 = vmatprep.subr.bf16.mxu1 %v3722_v0 }
0x1137   :  { %3519 = vmatpush3.bf16.msra.mxu1 %v3611_v23 }
0x1138   :  { %3520 = vmatprep.subr.bf16.mxu1 %v3722_v0 }
0x113b   :  { %3521 = vmatpush3.bf16.msra.mxu1 %v3612_v54 }
0x113c   :  { %3522 = vmatprep.subr.bf16.mxu1 %v3722_v0 }
0x113f   :  { %3523 = vmatpush3.bf16.msra.mxu1 %v3613_v28 }
0x1140   :  { %3524 = vmatprep.subr.bf16.mxu1 %v3722_v0 }
0x1143   :  { %3525 = vmatpush3.bf16.msra.mxu1 %v3614_v31 }
0x1144   :  { %3526 = vmatprep.subr.bf16.mxu1 %v3722_v0 }
0x1147   :  { %3527 = vmatpush3.bf16.msra.mxu1 %v3615_v1 }
0x1148   :  { %3528 = vmatprep.subr.bf16.mxu1 %v3722_v0 }
0x114b   :  { %3529 = vmatpush3.bf16.msra.mxu1 %v3616_v5 }
0x114c   :  { %3530 = vmatprep.subr.bf16.mxu1 %v3722_v0 }
0x114f   :  { %3531 = vmatpush3.bf16.msra.mxu1 %v3617_v4 }
0x11f2   :  { %v2186_v38 = vpop.f32.mrf.mxu1 }
0x11f3   :  { %v2193_v39 = vadd.f32 %v2186_v38, %v1823_v25 }
0x11f4   :  { %v3494_v40 = vpop.f32.mrf.mxu1 }
0x11f5   :  { %3706 = vtanh.f32 %v2193_v39 }
0x11f6   :  { %v2189_v42 = vpop.f32.mrf.mxu1 }
0x11f7   :  { %v2194_v43 = vadd.f32 %v2189_v42, %v1824_v41 }
0x11f8   :  { %v3495_v44 = vpop.f32.mrf.mxu1 }
0x11f9   :  { %3708 = vtanh.f32 %v2194_v43 }
0x1202   :  { %v3707_v45 = vpop.eup %3706 }
0x1206   :  { %v3709_v52 = vpop.eup %3708 }
0x1207   :  { %v2197_v30 = vpack.c.bf16 %v3709_v52, %v3707_v45 }
0x1209   :  { %3513 = vmatmul.mubr.bf16.vlgmr.msra.gmra.mxu0 %v2197_v30 }
0x12c9   :  { %v2232_v8 = vpop.f32.mrf.mxu0 }
0x12ca   :  { %v2239_v10 = vadd.f32 %v2232_v8, %v1825_v6 }
0x12cb   :  { %v3514_v13 = vpop.f32.mrf.mxu0 }
0x12cc   :  { %3710 = vtanh.f32 %v2239_v10 }
0x12cd   :  { %v2235_v46 = vpop.f32.mrf.mxu0 }
0x12ce   :  { %v2240_v17 = vadd.f32 %v2235_v46, %v1826_v15 }
0x12cf   :  { %v3515_v47 = vpop.f32.mrf.mxu0 }
0x12d0   :  { %3712 = vtanh.f32 %v2240_v17 }
0x12d9   :  { %v3711_v0 = vpop.eup %3710 }
0x12da   :  { %2544 = vst [vmem:[%s4660_s9 + $0x20] sm:$0xff] %v3711_v0 }
0x12dd   :  { %v3713_v49 = vpop.eup %3712 }
0x12de   :  { %2545 = vst [vmem:[%s4660_s9 + $0x28] sm:$0xff] %v3713_v49  ;;  %v2246_v27 = vpack.c.bf16 %v3713_v49, %v3711_v0 }
0x12e0   :  { %3533 = vmatmul.mubr.bf16.vlgmr.msra.gmra.mxu1 %v2246_v27 }
0x13a0   :  { %v2352_v29 = vpop.f32.mrf.mxu1 }
0x13a1   :  { %v2353_v51 = vadd.f32 %v2546_v7, %v2352_v29 }
0x13a2   :  { %v3534_v56 = vpop.f32.mrf.mxu1 }
0x13a3   :  { %v2359_v57 = vsub.f32 0.0, %v2353_v51 }
0x13a4   :  { %v2355_v48 = vpop.f32.mrf.mxu1 }
0x13a5   :  { %v2361_v63 = vmul.f32 1.442695, %v2359_v57  ;;  %v2356_v2 = vadd.f32 %v2546_v7, %v2355_v48 }
0x13a6   :  { %v3535_v3 = vpop.f32.mrf.mxu1 }
0x13a7   :  { %3714 = vpow2.f32 %v2361_v63  ;;  %v2360_v9 = vsub.f32 0.0, %v2356_v2 }
0x13a9   :  { %v2363_v11 = vmul.f32 1.442695, %v2360_v9 }
0x13ab   :  { %3716 = vpow2.f32 %v2363_v11 }
0x13b4   :  { %v3715_v12 = vpop.eup %3714 }
0x13b5   :  { %v2365_v14 = vadd.f32 1.0, %v3715_v12 }
0x13b7   :  { %3718 = vrcp.f32 %v2365_v14 }
0x13b8   :  { %v3717_v16 = vpop.eup %3716 }
0x13b9   :  { %v2366_v18 = vadd.f32 1.0, %v3717_v16 }
0x13bb   :  { %3720 = vrcp.f32 %v2366_v18 }
0x13c4   :  { %v3719_v50 = vpop.eup %3718 }
0x13c5   :  { %2371 = vst [vmem:[%s4663_s8] sm:$0xff] %v3719_v50 }
0x13c8   :  { %v3721_v19 = vpop.eup %3720 }
0x13c9   :  { %2372 = vst [vmem:[%s4663_s8 + $0x8] sm:$0xff] %v3721_v19 }

</bundles_post_ra>
